<compile_context>
chip_gen: v5e
topology: v5e:2x2
jax: 0.10.0
libtpu: 0.0.40
codegen_flags: <defaults>
</compile_context>

<pallas_src>
import jax
import jax.numpy as jnp
from jax.experimental import pallas as pl
from jax.experimental.pallas import tpu as pltpu

EPS = 1e-5  # PyTorch nn.LayerNorm default


# ----------------------------- Pallas kernel ------------------------------- #
def template_embedder_kernel(z_ref, s40_ref, rtab_ref, ctab_ref, mi_ref, mj_ref,
                             gz_ref, bz_ref, wpair_ref, w40_ref,
                             gt_ref, bt_ref, wout_ref,
                             out_ref,
                             zproj_sc, uacc_sc):
    t = pl.program_id(3)
    n_templ = pl.num_programs(3)
    ti, tj, c_z = z_ref.shape
    c_t = wpair_ref.shape[1]
    rows = ti * tj

    @pl.when(t == 0)
    def _init():
        # proj_pair: LayerNorm(c_z) + LinearNoBias(c_z -> c_template)
        z = z_ref[...].astype(jnp.float32).reshape(rows, c_z)
        mu = jnp.mean(z, axis=-1, keepdims=True)
        var = jnp.mean((z - mu) ** 2, axis=-1, keepdims=True)
        zn = (z - mu) * jax.lax.rsqrt(var + EPS)
        zn = zn * gz_ref[...] + bz_ref[...]
        zproj_sc[...] = jnp.dot(zn, wpair_ref[...],
                                preferred_element_type=jnp.float32)
        uacc_sc[...] = jnp.zeros_like(uacc_sc)

    # linear_templ_feat, rank-split:
    #   per-pair 40-channel stream (bf16, exact {0,1} values -> upcast is exact)
    s40 = s40_ref[...].astype(jnp.float32).reshape(rows, s40_ref.shape[-1])
    pair_dot = jnp.dot(s40, w40_ref[...], preferred_element_type=jnp.float32)
    #   per-token restype tables with the pairwise mask factored as mask_i*mask_j
    rest = (rtab_ref[...][:, None, :] * mj_ref[...][None, :, :]
            + mi_ref[...][:, None, :] * ctab_ref[...][None, :, :])     # (ti,tj,c_t)

    v = zproj_sc[...] + pair_dot + rest.reshape(rows, c_t)
    # TODO(synk): `v + pair_stack(v)` residual omitted (TemplatePairStack source
    #             not available in the provided module listing).

    # u += v_to_u_ln(v)
    mu = jnp.mean(v, axis=-1, keepdims=True)
    var = jnp.mean((v - mu) ** 2, axis=-1, keepdims=True)
    vn = (v - mu) * jax.lax.rsqrt(var + EPS) * gt_ref[...] + bt_ref[...]
    uacc_sc[...] += vn

    @pl.when(t == n_templ - 1)
    def _finalize():
        # u = u / n_templ ; u = output_proj(u) = LinearNoBias(ReLU(u))
        u = uacc_sc[...] * (1.0 / n_templ)          # static reciprocal multiply
        u = jnp.maximum(u, 0.0)
        o = jnp.dot(u, wout_ref[...], preferred_element_type=jnp.float32)
        out_ref[...] = o.reshape(ti, tj, c_z).astype(out_ref.dtype)


# ------------------------------- JAX glue ----------------------------------- #
def dgram_from_positions(pos, min_bin=3.25, max_bin=50.75, no_bins=39, inf=1e8):
    d2 = jnp.sum((pos[..., None, :] - pos[..., None, :, :]) ** 2,
                 axis=-1, keepdims=True)
    lower = jnp.linspace(min_bin, max_bin, no_bins) ** 2
    upper = jnp.concatenate([lower[1:], jnp.array([inf], dtype=lower.dtype)])
    return ((d2 > lower) & (d2 < upper)).astype(pos.dtype)


def build_template_feat(aatype, pseudo_beta, pseudo_beta_mask, asym_id):
    """Full 84-dim template pair features exactly as the PyTorch module (used by the
    pure-JAX reference only; the kernel consumes the rank-split decomposition)."""
    bs, n_templ, n_token = aatype.shape
    dgram = dgram_from_positions(pseudo_beta)                     # [bs,T,N,N,39]
    restype = jax.nn.one_hot(aatype, 22, dtype=dgram.dtype)       # [bs,T,N,22]
    pbm = pseudo_beta_mask[..., None] * pseudo_beta_mask[..., None, :]  # [bs,T,N,N]
    feat = jnp.concatenate([dgram, pbm[..., None]], axis=-1)      # 40
    same = jnp.isclose(asym_id[..., None, :],
                       asym_id[..., None]).astype(feat.dtype)     # [bs,N,N]
    feat = feat * same[:, None, :, :, None]
    ri = jnp.broadcast_to(restype[..., :, None, :],
                          (bs, n_templ, n_token, n_token, 22))
    rj = jnp.broadcast_to(restype[..., None, :, :],
                          (bs, n_templ, n_token, n_token, 22))
    feat = jnp.concatenate([feat, ri, rj], axis=-1)               # 84
    feat = feat * pbm[..., None]
    return feat


def init_params(key, c_z, c_t, no_template_features=84):
    ks = jax.random.split(key, 7)
    return {
        "ln_z_g": 1.0 + 0.1 * jax.random.normal(ks[0], (1, c_z), jnp.float32),
        "ln_z_b": 0.1 * jax.random.normal(ks[1], (1, c_z), jnp.float32),
        "w_pair": jax.random.normal(ks[2], (c_z, c_t), jnp.float32) / jnp.sqrt(c_z),
        "w_templ": jax.random.normal(ks[3], (no_template_features, c_t),
                                     jnp.float32) / jnp.sqrt(1.0 * no_template_features),
        "ln_t_g": 1.0 + 0.1 * jax.random.normal(ks[4], (1, c_t), jnp.float32),
        "ln_t_b": 0.1 * jax.random.normal(ks[5], (1, c_t), jnp.float32),
        "w_out": jax.random.normal(ks[6], (c_t, c_z), jnp.float32) / jnp.sqrt(1.0 * c_t),
    }


def _pick_tile(n, target):
    """Largest divisor of n that is a multiple of 8 and <= target; fall back to n
    (a full-extent block is always layout-legal)."""
    best = None
    d = 8
    while d <= min(n, target):
        if n % d == 0:
            best = d
        d += 8
    return best if best is not None else n


def template_embedder(features, z_trunk, pair_mask, params, *,
                      tile_i=32, tile_j=64):
    # pair_mask is only consumed by the (omitted) TemplatePairStack.
    del pair_mask
    aatype = features["template_aatype"]                  # [bs, T, N] int
    pos = features["template_pseudo_beta"]                # [bs, T, N, 3]
    mask = features["template_pseudo_beta_mask"].astype(jnp.float32)   # [bs, T, N]
    asym = features["asym_id"]                            # [bs, N]
    bs, n_templ, n_token = aatype.shape
    c_z = z_trunk.shape[-1]
    c_t = params["w_pair"].shape[-1]
    w_templ = params["w_templ"]                           # [84, c_t]

    # ~2048-row pair tiles at production dims; clipped to divisors of N for small N.
    ti = _pick_tile(n_token, tile_i)
    tj = _pick_tile(n_token, tile_j)

    # ---- 40-channel per-pair stream: [dgram(39), pbm(1)] * same_asym * pbm ----
    # Values are exactly {0,1}, so the bf16 cast is lossless and halves HBM bytes.
    dgram = dgram_from_positions(pos)                                   # [bs,T,N,N,39]
    pbm = mask[..., :, None] * mask[..., None, :]                       # [bs,T,N,N]
    same = jnp.isclose(asym[..., None, :],
                       asym[..., None]).astype(jnp.float32)             # [bs,N,N]
    s40 = jnp.concatenate([dgram, pbm[..., None]], axis=-1)             # 40 channels
    s40 = (s40 * same[:, None, :, :, None] * pbm[..., None]).astype(jnp.bfloat16)

    # ---- rank-1 restype terms: one_hot(aatype) @ W  ==  row gather of W ----
    # pbm * (restype_i @ W1 + restype_j @ W2)
    #   = mask_j * (mask_i * W1[aatype_i]) + mask_i * (mask_j * W2[aatype_j])
    rtab = jnp.take(w_templ[40:62], aatype, axis=0) * mask[..., None]   # [bs,T,N,c_t]
    ctab = jnp.take(w_templ[62:84], aatype, axis=0) * mask[..., None]   # [bs,T,N,c_t]
    mask4 = mask[..., None]                                             # [bs,T,N,1]
    w40 = w_templ[:40]                                                  # [40, c_t]

    sq = pl.Squeezed()
    const2 = lambda b, i, j, t: (0, 0)
    grid = (bs, n_token // ti, n_token // tj, n_templ)

    out = pl.pallas_call(
        template_embedder_kernel,
        out_shape=jax.ShapeDtypeStruct((bs, n_token, n_token, c_z), z_trunk.dtype),
        grid_spec=pltpu.PrefetchScalarGridSpec(
            num_scalar_prefetch=0,
            grid=grid,
            in_specs=[
                pl.BlockSpec((sq, ti, tj, c_z), lambda b, i, j, t: (b, i, j, 0)),       # z
                pl.BlockSpec((sq, sq, ti, tj, 40), lambda b, i, j, t: (b, t, i, j, 0)),  # s40
                pl.BlockSpec((sq, sq, ti, c_t), lambda b, i, j, t: (b, t, i, 0)),       # row tab
                pl.BlockSpec((sq, sq, tj, c_t), lambda b, i, j, t: (b, t, j, 0)),       # col tab
                pl.BlockSpec((sq, sq, ti, 1), lambda b, i, j, t: (b, t, i, 0)),         # mask_i
                pl.BlockSpec((sq, sq, tj, 1), lambda b, i, j, t: (b, t, j, 0)),         # mask_j
                pl.BlockSpec((1, c_z), const2),       # ln_z gamma
                pl.BlockSpec((1, c_z), const2),       # ln_z beta
                pl.BlockSpec((c_z, c_t), const2),     # w_pair
                pl.BlockSpec((40, c_t), const2),      # w_templ[:40]
                pl.BlockSpec((1, c_t), const2),       # ln_t gamma
                pl.BlockSpec((1, c_t), const2),       # ln_t beta
                pl.BlockSpec((c_t, c_z), const2),     # w_out
            ],
            out_specs=pl.BlockSpec((sq, ti, tj, c_z), lambda b, i, j, t: (b, i, j, 0)),
            scratch_shapes=[pltpu.VMEM((ti * tj, c_t), jnp.float32),    # z_proj
                            pltpu.VMEM((ti * tj, c_t), jnp.float32)],   # u accum
        ),
        compiler_params=pltpu.CompilerParams(
            dimension_semantics=("parallel", "parallel", "parallel", "arbitrary")),
    )(z_trunk, s40, rtab, ctab, mask4, mask4,
      params["ln_z_g"], params["ln_z_b"], params["w_pair"], w40,
      params["ln_t_g"], params["ln_t_b"], params["w_out"])

    return out


# ---------------------------- pure-JAX reference ---------------------------- #
def template_embedder_ref(features, z_trunk, params):
    def ln(x, g, b):
        mu = x.mean(-1, keepdims=True)
        var = ((x - mu) ** 2).mean(-1, keepdims=True)
        return (x - mu) / jnp.sqrt(var + EPS) * g[0] + b[0]

    feat = build_template_feat(features["template_aatype"],
                               features["template_pseudo_beta"],
                               features["template_pseudo_beta_mask"],
                               features["asym_id"])
    hp = jax.lax.Precision.HIGHEST
    zproj = jnp.dot(ln(z_trunk, params["ln_z_g"], params["ln_z_b"]),
                    params["w_pair"], precision=hp)
    n_templ = feat.shape[1]
    u = jnp.zeros_like(zproj)
    for t in range(n_templ):
        v = zproj + jnp.dot(feat[:, t], params["w_templ"], precision=hp)
        u = u + ln(v, params["ln_t_g"], params["ln_t_b"])
    u = u / n_templ
    return jnp.dot(jnp.maximum(u, 0.0), params["w_out"], precision=hp)


# --------------------------------- main ------------------------------------- #
if __name__ == "__main__":
    bs, n_templ, n_token = 2, 2, 8
    c_z, c_t = 32, 16

    key = jax.random.PRNGKey(0)
    kf = jax.random.split(key, 8)

    features = {
        "template_aatype": jax.random.randint(kf[0], (bs, n_templ, n_token), 0, 22),
        "template_pseudo_beta": 10.0 * jax.random.normal(
            kf[1], (bs, n_templ, n_token, 3), jnp.float32),
        "template_pseudo_beta_mask": (jax.random.uniform(
            kf[2], (bs, n_templ, n_token)) > 0.2).astype(jnp.float32),
        "asym_id": jnp.tile(
            jnp.repeat(jnp.arange(2, dtype=jnp.float32), n_token // 2)[None, :],
            (bs, 1)),
    }
    z_trunk = jax.random.normal(kf[3], (bs, n_token, n_token, c_z), jnp.float32)
    pair_mask = jnp.ones((bs, n_token, n_token), jnp.float32)

    params = init_params(kf[4], c_z, c_t)

    out = template_embedder(features, z_trunk, pair_mask, params)
    out = jax.block_until_ready(out)

    ref = template_embedder_ref(features, z_trunk, params)
    assert out.shape == (bs, n_token, n_token, c_z)
    assert jnp.allclose(out, ref, atol=1e-3, rtol=1e-3), (
        f"max abs err {jnp.max(jnp.abs(out - ref))}")

    print("KERNEL_OK")
</pallas_src>

<mosaic_0001>
module attributes {stable_mosaic.version = 11 : i64} {
  func.func @template_embedder_kernel(%arg0: i32, %arg1: i32, %arg2: i32, %arg3: i32, %arg4: memref<1x8x8x32xf32, #tpu.memory_space<vmem>>, %arg5: memref<1x1x8x8x40xbf16, #tpu.memory_space<vmem>>, %arg6: memref<1x1x8x16xf32, #tpu.memory_space<vmem>>, %arg7: memref<1x1x8x16xf32, #tpu.memory_space<vmem>>, %arg8: memref<1x1x8x1xf32, #tpu.memory_space<vmem>>, %arg9: memref<1x1x8x1xf32, #tpu.memory_space<vmem>>, %arg10: memref<1x32xf32, #tpu.memory_space<vmem>>, %arg11: memref<1x32xf32, #tpu.memory_space<vmem>>, %arg12: memref<32x16xf32, #tpu.memory_space<vmem>>, %arg13: memref<40x16xf32, #tpu.memory_space<vmem>>, %arg14: memref<1x16xf32, #tpu.memory_space<vmem>>, %arg15: memref<1x16xf32, #tpu.memory_space<vmem>>, %arg16: memref<16x32xf32, #tpu.memory_space<vmem>>, %arg17: memref<1x8x8x32xf32, #tpu.memory_space<vmem>>, %arg18: memref<64x16xf32, #tpu.memory_space<vmem>>, %arg19: memref<64x16xf32, #tpu.memory_space<vmem>>) attributes {dimension_semantics = [#tpu.dimension_semantics<parallel>, #tpu.dimension_semantics<parallel>, #tpu.dimension_semantics<parallel>, #tpu.dimension_semantics<arbitrary>], iteration_bounds = array<i64: 2, 1, 1, 2>, scalar_prefetch = 0 : i64, scratch_operands = 2 : i64, tpu.core_type = #tpu.core_type<tc>, window_params = [{transform_indices = @transform_0, window_bounds = array<i64: 1, 8, 8, 32>}, {transform_indices = @transform_1, window_bounds = array<i64: 1, 1, 8, 8, 40>}, {transform_indices = @transform_2, window_bounds = array<i64: 1, 1, 8, 16>}, {transform_indices = @transform_3, window_bounds = array<i64: 1, 1, 8, 16>}, {transform_indices = @transform_4, window_bounds = array<i64: 1, 1, 8, 1>}, {transform_indices = @transform_5, window_bounds = array<i64: 1, 1, 8, 1>}, {pipeline_mode = #tpu.pipeline_mode<synchronous>, transform_indices = @transform_6, window_bounds = array<i64: 1, 32>}, {pipeline_mode = #tpu.pipeline_mode<synchronous>, transform_indices = @transform_7, window_bounds = array<i64: 1, 32>}, {pipeline_mode = #tpu.pipeline_mode<synchronous>, transform_indices = @transform_8, window_bounds = array<i64: 32, 16>}, {pipeline_mode = #tpu.pipeline_mode<synchronous>, transform_indices = @transform_9, window_bounds = array<i64: 40, 16>}, {pipeline_mode = #tpu.pipeline_mode<synchronous>, transform_indices = @transform_10, window_bounds = array<i64: 1, 16>}, {pipeline_mode = #tpu.pipeline_mode<synchronous>, transform_indices = @transform_11, window_bounds = array<i64: 1, 16>}, {pipeline_mode = #tpu.pipeline_mode<synchronous>, transform_indices = @transform_12, window_bounds = array<i64: 16, 32>}, {transform_indices = @transform_13, window_bounds = array<i64: 1, 8, 8, 32>}]} {
    %c0_i32 = arith.constant 0 : i32
    %0 = arith.cmpi eq, %arg3, %c0_i32 : i32
    %1 = arith.extui %0 : i1 to i32
    %c0_i32_0 = arith.constant 0 : i32
    %2 = arith.cmpi ne, %1, %c0_i32_0 : i32
    scf.if %2 {
      %c0_39 = arith.constant 0 : index
      %c0_40 = arith.constant 0 : index
      %c0_41 = arith.constant 0 : index
      %c0_42 = arith.constant 0 : index
      %62 = vector.load %arg4[%c0_39, %c0_40, %c0_41, %c0_42] : memref<1x8x8x32xf32, #tpu.memory_space<vmem>>, vector<1x8x8x32xf32>
      %63 = vector.shape_cast %62 : vector<1x8x8x32xf32> to vector<8x8x32xf32>
      %64 = vector.shape_cast %63 : vector<8x8x32xf32> to vector<64x32xf32>
      %cst_43 = arith.constant dense<0.000000e+00> : vector<64xf32>
      %65 = vector.multi_reduction <add>, %64, %cst_43 [1] : vector<64x32xf32> to vector<64xf32>
      %66 = vector.shape_cast %65 : vector<64xf32> to vector<64x1xf32>
      %cst_44 = arith.constant 3.200000e+01 : f32
      %67 = vector.broadcast %cst_44 : f32 to vector<64x1xf32>
      %68 = arith.divf %66, %67 : vector<64x1xf32>
      %69 = vector.broadcast %68 : vector<64x1xf32> to vector<64x32xf32>
      %70 = arith.subf %64, %69 : vector<64x32xf32>
      %71 = arith.mulf %70, %70 : vector<64x32xf32>
      %cst_45 = arith.constant dense<0.000000e+00> : vector<64xf32>
      %72 = vector.multi_reduction <add>, %71, %cst_45 [1] : vector<64x32xf32> to vector<64xf32>
      %73 = vector.shape_cast %72 : vector<64xf32> to vector<64x1xf32>
      %cst_46 = arith.constant 3.200000e+01 : f32
      %74 = vector.broadcast %cst_46 : f32 to vector<64x1xf32>
      %75 = arith.divf %73, %74 : vector<64x1xf32>
      %76 = vector.broadcast %68 : vector<64x1xf32> to vector<64x32xf32>
      %77 = arith.subf %64, %76 : vector<64x32xf32>
      %cst_47 = arith.constant 9.99999974E-6 : f32
      %78 = vector.broadcast %cst_47 : f32 to vector<64x1xf32>
      %79 = arith.addf %75, %78 : vector<64x1xf32>
      %80 = math.rsqrt %79 : vector<64x1xf32>
      %81 = vector.broadcast %80 : vector<64x1xf32> to vector<64x32xf32>
      %82 = arith.mulf %77, %81 : vector<64x32xf32>
      %c0_48 = arith.constant 0 : index
      %c0_49 = arith.constant 0 : index
      %83 = vector.load %arg10[%c0_48, %c0_49] : memref<1x32xf32, #tpu.memory_space<vmem>>, vector<1x32xf32>
      %84 = vector.broadcast %83 : vector<1x32xf32> to vector<64x32xf32>
      %85 = arith.mulf %82, %84 : vector<64x32xf32>
      %c0_50 = arith.constant 0 : index
      %c0_51 = arith.constant 0 : index
      %86 = vector.load %arg11[%c0_50, %c0_51] : memref<1x32xf32, #tpu.memory_space<vmem>>, vector<1x32xf32>
      %87 = vector.broadcast %86 : vector<1x32xf32> to vector<64x32xf32>
      %88 = arith.addf %85, %87 : vector<64x32xf32>
      %c0_52 = arith.constant 0 : index
      %c0_53 = arith.constant 0 : index
      %89 = vector.load %arg12[%c0_52, %c0_53] : memref<32x16xf32, #tpu.memory_space<vmem>>, vector<32x16xf32>
      %cst_54 = arith.constant dense<0.000000e+00> : vector<64x16xf32>
      %90 = tpu.matmul %88, %89, %cst_54 {dimension_numbers = #tpu.dot_dimension_numbers<[1], [0], [0], [1], [0, 0, 1, 1], [], []>} : vector<64x32xf32>, vector<32x16xf32>, vector<64x16xf32> -> vector<64x16xf32>
      %c0_55 = arith.constant 0 : index
      %c0_56 = arith.constant 0 : index
      %91 = vector.load %arg18[%c0_55, %c0_56] : memref<64x16xf32, #tpu.memory_space<vmem>>, vector<64x16xf32>
      tpu.vector_store %arg18[%c0_55, %c0_56], %90 {strides = array<i32>} : memref<64x16xf32, #tpu.memory_space<vmem>>, vector<64x16xf32>,
      %cst_57 = arith.constant 0.000000e+00 : f32
      %92 = vector.broadcast %cst_57 : f32 to vector<64x16xf32>
      %c0_58 = arith.constant 0 : index
      %c0_59 = arith.constant 0 : index
      %93 = vector.load %arg19[%c0_58, %c0_59] : memref<64x16xf32, #tpu.memory_space<vmem>>, vector<64x16xf32>
      tpu.vector_store %arg19[%c0_58, %c0_59], %92 {strides = array<i32>} : memref<64x16xf32, #tpu.memory_space<vmem>>, vector<64x16xf32>,
    } else {
    }
    %c0 = arith.constant 0 : index
    %c0_1 = arith.constant 0 : index
    %c0_2 = arith.constant 0 : index
    %c0_3 = arith.constant 0 : index
    %c0_4 = arith.constant 0 : index
    %3 = vector.load %arg5[%c0, %c0_1, %c0_2, %c0_3, %c0_4] : memref<1x1x8x8x40xbf16, #tpu.memory_space<vmem>>, vector<1x1x8x8x40xbf16>
    %4 = vector.shape_cast %3 : vector<1x1x8x8x40xbf16> to vector<8x8x40xbf16>
    %5 = arith.extf %4 : vector<8x8x40xbf16> to vector<8x8x40xf32>
    %6 = vector.shape_cast %5 : vector<8x8x40xf32> to vector<64x40xf32>
    %c0_5 = arith.constant 0 : index
    %c0_6 = arith.constant 0 : index
    %7 = vector.load %arg13[%c0_5, %c0_6] : memref<40x16xf32, #tpu.memory_space<vmem>>, vector<40x16xf32>
    %cst = arith.constant dense<0.000000e+00> : vector<64x16xf32>
    %8 = tpu.matmul %6, %7, %cst {dimension_numbers = #tpu.dot_dimension_numbers<[1], [0], [0], [1], [0, 0, 1, 1], [], []>} : vector<64x40xf32>, vector<40x16xf32>, vector<64x16xf32> -> vector<64x16xf32>
    %c0_7 = arith.constant 0 : index
    %c0_8 = arith.constant 0 : index
    %c0_9 = arith.constant 0 : index
    %c0_10 = arith.constant 0 : index
    %9 = vector.load %arg6[%c0_7, %c0_8, %c0_9, %c0_10] : memref<1x1x8x16xf32, #tpu.memory_space<vmem>>, vector<1x1x8x16xf32>
    %10 = vector.shape_cast %9 : vector<1x1x8x16xf32> to vector<8x16xf32>
    %11 = vector.shape_cast %10 : vector<8x16xf32> to vector<8x1x16xf32>
    %c0_11 = arith.constant 0 : index
    %c0_12 = arith.constant 0 : index
    %c0_13 = arith.constant 0 : index
    %c0_14 = arith.constant 0 : index
    %12 = vector.load %arg9[%c0_11, %c0_12, %c0_13, %c0_14] : memref<1x1x8x1xf32, #tpu.memory_space<vmem>>, vector<1x1x8x1xf32>
    %13 = vector.shape_cast %12 : vector<1x1x8x1xf32> to vector<8x1xf32>
    %14 = vector.shape_cast %13 : vector<8x1xf32> to vector<1x8x1xf32>
    %15 = vector.broadcast %11 : vector<8x1x16xf32> to vector<8x8x16xf32>
    %16 = vector.broadcast %14 : vector<1x8x1xf32> to vector<8x8x16xf32>
    %17 = arith.mulf %15, %16 : vector<8x8x16xf32>
    %c0_15 = arith.constant 0 : index
    %c0_16 = arith.constant 0 : index
    %c0_17 = arith.constant 0 : index
    %c0_18 = arith.constant 0 : index
    %18 = vector.load %arg8[%c0_15, %c0_16, %c0_17, %c0_18] : memref<1x1x8x1xf32, #tpu.memory_space<vmem>>, vector<1x1x8x1xf32>
    %19 = vector.shape_cast %18 : vector<1x1x8x1xf32> to vector<8x1xf32>
    %20 = vector.shape_cast %19 : vector<8x1xf32> to vector<8x1x1xf32>
    %c0_19 = arith.constant 0 : index
    %c0_20 = arith.constant 0 : index
    %c0_21 = arith.constant 0 : index
    %c0_22 = arith.constant 0 : index
    %21 = vector.load %arg7[%c0_19, %c0_20, %c0_21, %c0_22] : memref<1x1x8x16xf32, #tpu.memory_space<vmem>>, vector<1x1x8x16xf32>
    %22 = vector.shape_cast %21 : vector<1x1x8x16xf32> to vector<8x16xf32>
    %23 = vector.shape_cast %22 : vector<8x16xf32> to vector<1x8x16xf32>
    %24 = vector.broadcast %20 : vector<8x1x1xf32> to vector<8x8x16xf32>
    %25 = vector.broadcast %23 : vector<1x8x16xf32> to vector<8x8x16xf32>
    %26 = arith.mulf %24, %25 : vector<8x8x16xf32>
    %27 = arith.addf %17, %26 : vector<8x8x16xf32>
    %c0_23 = arith.constant 0 : index
    %c0_24 = arith.constant 0 : index
    %28 = vector.load %arg18[%c0_23, %c0_24] : memref<64x16xf32, #tpu.memory_space<vmem>>, vector<64x16xf32>
    %29 = arith.addf %28, %8 : vector<64x16xf32>
    %30 = vector.shape_cast %27 : vector<8x8x16xf32> to vector<64x16xf32>
    %31 = arith.addf %29, %30 : vector<64x16xf32>
    %cst_25 = arith.constant dense<0.000000e+00> : vector<64xf32>
    %32 = vector.multi_reduction <add>, %31, %cst_25 [1] : vector<64x16xf32> to vector<64xf32>
    %33 = vector.shape_cast %32 : vector<64xf32> to vector<64x1xf32>
    %cst_26 = arith.constant 1.600000e+01 : f32
    %34 = vector.broadcast %cst_26 : f32 to vector<64x1xf32>
    %35 = arith.divf %33, %34 : vector<64x1xf32>
    %36 = vector.broadcast %35 : vector<64x1xf32> to vector<64x16xf32>
    %37 = arith.subf %31, %36 : vector<64x16xf32>
    %38 = arith.mulf %37, %37 : vector<64x16xf32>
    %cst_27 = arith.constant dense<0.000000e+00> : vector<64xf32>
    %39 = vector.multi_reduction <add>, %38, %cst_27 [1] : vector<64x16xf32> to vector<64xf32>
    %40 = vector.shape_cast %39 : vector<64xf32> to vector<64x1xf32>
    %cst_28 = arith.constant 1.600000e+01 : f32
    %41 = vector.broadcast %cst_28 : f32 to vector<64x1xf32>
    %42 = arith.divf %40, %41 : vector<64x1xf32>
    %43 = vector.broadcast %35 : vector<64x1xf32> to vector<64x16xf32>
    %44 = arith.subf %31, %43 : vector<64x16xf32>
    %cst_29 = arith.constant 9.99999974E-6 : f32
    %45 = vector.broadcast %cst_29 : f32 to vector<64x1xf32>
    %46 = arith.addf %42, %45 : vector<64x1xf32>
    %47 = math.rsqrt %46 : vector<64x1xf32>
    %48 = vector.broadcast %47 : vector<64x1xf32> to vector<64x16xf32>
    %49 = arith.mulf %44, %48 : vector<64x16xf32>
    %c0_30 = arith.constant 0 : index
    %c0_31 = arith.constant 0 : index
    %50 = vector.load %arg14[%c0_30, %c0_31] : memref<1x16xf32, #tpu.memory_space<vmem>>, vector<1x16xf32>
    %51 = vector.broadcast %50 : vector<1x16xf32> to vector<64x16xf32>
    %52 = arith.mulf %49, %51 : vector<64x16xf32>
    %c0_32 = arith.constant 0 : index
    %c0_33 = arith.constant 0 : index
    %53 = vector.load %arg15[%c0_32, %c0_33] : memref<1x16xf32, #tpu.memory_space<vmem>>, vector<1x16xf32>
    %54 = vector.broadcast %53 : vector<1x16xf32> to vector<64x16xf32>
    %55 = arith.addf %52, %54 : vector<64x16xf32>
    %c0_34 = arith.constant 0 : index
    %c0_35 = arith.constant 0 : index
    %56 = vector.load %arg19[%c0_34, %c0_35] : memref<64x16xf32, #tpu.memory_space<vmem>>, vector<64x16xf32>
    %57 = arith.addf %56, %55 : vector<64x16xf32>
    %c0_36 = arith.constant 0 : index
    %c0_37 = arith.constant 0 : index
    %58 = vector.load %arg19[%c0_36, %c0_37] : memref<64x16xf32, #tpu.memory_space<vmem>>, vector<64x16xf32>
    tpu.vector_store %arg19[%c0_36, %c0_37], %57 {strides = array<i32>} : memref<64x16xf32, #tpu.memory_space<vmem>>, vector<64x16xf32>,
    %c1_i32 = arith.constant 1 : i32
    %59 = arith.cmpi eq, %arg3, %c1_i32 : i32
    %60 = arith.extui %59 : i1 to i32
    %c0_i32_38 = arith.constant 0 : i32
    %61 = arith.cmpi ne, %60, %c0_i32_38 : i32
    scf.if %61 {
      %c0_39 = arith.constant 0 : index
      %c0_40 = arith.constant 0 : index
      %62 = vector.load %arg19[%c0_39, %c0_40] : memref<64x16xf32, #tpu.memory_space<vmem>>, vector<64x16xf32>
      %cst_41 = arith.constant 5.000000e-01 : f32
      %63 = vector.broadcast %cst_41 : f32 to vector<64x16xf32>
      %64 = arith.mulf %62, %63 : vector<64x16xf32>
      %cst_42 = arith.constant 0.000000e+00 : f32
      %65 = vector.broadcast %cst_42 : f32 to vector<64x16xf32>
      %66 = arith.maximumf %64, %65 : vector<64x16xf32>
      %c0_43 = arith.constant 0 : index
      %c0_44 = arith.constant 0 : index
      %67 = vector.load %arg16[%c0_43, %c0_44] : memref<16x32xf32, #tpu.memory_space<vmem>>, vector<16x32xf32>
      %cst_45 = arith.constant dense<0.000000e+00> : vector<64x32xf32>
      %68 = tpu.matmul %66, %67, %cst_45 {dimension_numbers = #tpu.dot_dimension_numbers<[1], [0], [0], [1], [0, 0, 1, 1], [], []>} : vector<64x16xf32>, vector<16x32xf32>, vector<64x32xf32> -> vector<64x32xf32>
      %69 = vector.shape_cast %68 : vector<64x32xf32> to vector<8x8x32xf32>
      %c0_46 = arith.constant 0 : index
      %c0_47 = arith.constant 0 : index
      %c0_48 = arith.constant 0 : index
      %c0_49 = arith.constant 0 : index
      %70 = vector.load %arg17[%c0_46, %c0_47, %c0_48, %c0_49] : memref<1x8x8x32xf32, #tpu.memory_space<vmem>>, vector<1x8x8x32xf32>
      %71 = vector.shape_cast %70 : vector<1x8x8x32xf32> to vector<8x8x32xf32>
      %72 = vector.shape_cast %69 : vector<8x8x32xf32> to vector<1x8x8x32xf32>
      tpu.vector_store %arg17[%c0_46, %c0_47, %c0_48, %c0_49], %72 {strides = array<i32>} : memref<1x8x8x32xf32, #tpu.memory_space<vmem>>, vector<1x8x8x32xf32>,
    } else {
    }
    return
  }
  func.func @transform_0(%arg0: i32, %arg1: i32, %arg2: i32, %arg3: i32) -> (i32, i32, i32, i32) {
    %c0_i32 = arith.constant 0 : i32
    %c0_i32_0 = arith.constant 0 : i32
    return %arg0, %arg1, %arg2, %c0_i32 : i32, i32, i32, i32
  }
  func.func @transform_1(%arg0: i32, %arg1: i32, %arg2: i32, %arg3: i32) -> (i32, i32, i32, i32, i32) {
    %c0_i32 = arith.constant 0 : i32
    %c0_i32_0 = arith.constant 0 : i32
    return %arg0, %arg3, %arg1, %arg2, %c0_i32 : i32, i32, i32, i32, i32
  }
  func.func @transform_2(%arg0: i32, %arg1: i32, %arg2: i32, %arg3: i32) -> (i32, i32, i32, i32) {
    %c0_i32 = arith.constant 0 : i32
    %c0_i32_0 = arith.constant 0 : i32
    return %arg0, %arg3, %arg1, %c0_i32 : i32, i32, i32, i32
  }
  func.func @transform_3(%arg0: i32, %arg1: i32, %arg2: i32, %arg3: i32) -> (i32, i32, i32, i32) {
    %c0_i32 = arith.constant 0 : i32
    %c0_i32_0 = arith.constant 0 : i32
    return %arg0, %arg3, %arg2, %c0_i32 : i32, i32, i32, i32
  }
  func.func @transform_4(%arg0: i32, %arg1: i32, %arg2: i32, %arg3: i32) -> (i32, i32, i32, i32) {
    %c0_i32 = arith.constant 0 : i32
    %c0_i32_0 = arith.constant 0 : i32
    return %arg0, %arg3, %arg1, %c0_i32 : i32, i32, i32, i32
  }
  func.func @transform_5(%arg0: i32, %arg1: i32, %arg2: i32, %arg3: i32) -> (i32, i32, i32, i32) {
    %c0_i32 = arith.constant 0 : i32
    %c0_i32_0 = arith.constant 0 : i32
    return %arg0, %arg3, %arg2, %c0_i32 : i32, i32, i32, i32
  }
  func.func @transform_6(%arg0: i32, %arg1: i32, %arg2: i32, %arg3: i32) -> (i32, i32) {
    %c0_i32 = arith.constant 0 : i32
    %c0_i32_0 = arith.constant 0 : i32
    %c0_i32_1 = arith.constant 0 : i32
    return %c0_i32, %c0_i32_0 : i32, i32
  }
  func.func @transform_7(%arg0: i32, %arg1: i32, %arg2: i32, %arg3: i32) -> (i32, i32) {
    %c0_i32 = arith.constant 0 : i32
    %c0_i32_0 = arith.constant 0 : i32
    %c0_i32_1 = arith.constant 0 : i32
    return %c0_i32, %c0_i32_0 : i32, i32
  }
  func.func @transform_8(%arg0: i32, %arg1: i32, %arg2: i32, %arg3: i32) -> (i32, i32) {
    %c0_i32 = arith.constant 0 : i32
    %c0_i32_0 = arith.constant 0 : i32
    %c0_i32_1 = arith.constant 0 : i32
    return %c0_i32, %c0_i32_0 : i32, i32
  }
  func.func @transform_9(%arg0: i32, %arg1: i32, %arg2: i32, %arg3: i32) -> (i32, i32) {
    %c0_i32 = arith.constant 0 : i32
    %c0_i32_0 = arith.constant 0 : i32
    %c0_i32_1 = arith.constant 0 : i32
    return %c0_i32, %c0_i32_0 : i32, i32
  }
  func.func @transform_10(%arg0: i32, %arg1: i32, %arg2: i32, %arg3: i32) -> (i32, i32) {
    %c0_i32 = arith.constant 0 : i32
    %c0_i32_0 = arith.constant 0 : i32
    %c0_i32_1 = arith.constant 0 : i32
    return %c0_i32, %c0_i32_0 : i32, i32
  }
  func.func @transform_11(%arg0: i32, %arg1: i32, %arg2: i32, %arg3: i32) -> (i32, i32) {
    %c0_i32 = arith.constant 0 : i32
    %c0_i32_0 = arith.constant 0 : i32
    %c0_i32_1 = arith.constant 0 : i32
    return %c0_i32, %c0_i32_0 : i32, i32
  }
  func.func @transform_12(%arg0: i32, %arg1: i32, %arg2: i32, %arg3: i32) -> (i32, i32) {
    %c0_i32 = arith.constant 0 : i32
    %c0_i32_0 = arith.constant 0 : i32
    %c0_i32_1 = arith.constant 0 : i32
    return %c0_i32, %c0_i32_0 : i32, i32
  }
  func.func @transform_13(%arg0: i32, %arg1: i32, %arg2: i32, %arg3: i32) -> (i32, i32, i32, i32) {
    %c0_i32 = arith.constant 0 : i32
    %c0_i32_0 = arith.constant 0 : i32
    return %arg0, %arg1, %arg2, %c0_i32 : i32, i32, i32, i32
  }
}

</mosaic_0001>

<bundles_post_ra>
// kernel: tpu_custom_call.1
= control target key start
LH: loop header
LB: loop body
LE: loop exit
PB: predicated region body
PF: predicated region fallthrough
CT: control target
= control target key end

     0   :  { %s3050_s0 = inlined_call_operand.hbm [shape: f32[2,8,8,32], index: 0, kind: input, shape index: {}]   ;;  %s3051_s1 = inlined_call_operand.hbm [shape: bf16[2,2,8,8,40], index: 1, kind: input, shape index: {}]   ;;  %s3052_s2 = inlined_call_operand.vmem [shape: f32[2,2,8,16], index: 2, kind: input, shape index: {}]   ;;  %s3053_s3 = inlined_call_operand.vmem [shape: f32[2,2,8,16], index: 3, kind: input, shape index: {}]   ;;  %s3054_s4 = inlined_call_operand.vmem [shape: f32[2,2,8,1], index: 4, kind: input, shape index: {}]   ;;  %s3055_s5 = inlined_call_operand.vmem [shape: f32[2,2,8,1], index: 5, kind: input, shape index: {}]   ;;  %s3056_s6 = inlined_call_operand.vmem [shape: f32[1,32], index: 6, kind: input, shape index: {}]   ;;  %s3057_s7 = inlined_call_operand.vmem [shape: f32[1,32], index: 7, kind: input, shape index: {}]   ;;  %s3058_s8 = inlined_call_operand.vmem [shape: f32[32,16], index: 8, kind: input, shape index: {}]   ;;  %s3059_s9 = inlined_call_operand.vmem [shape: f32[40,16], index: 9, kind: input, shape index: {}]   ;;  %s3060_s10 = inlined_call_operand.vmem [shape: f32[1,16], index: 10, kind: input, shape index: {}]   ;;  %s3061_s11 = inlined_call_operand.vmem [shape: f32[1,16], index: 11, kind: input, shape index: {}]   ;;  %s3062_s12 = inlined_call_operand.vmem [shape: f32[16,32], index: 12, kind: input, shape index: {}]   ;;  %s3063_s13 = inlined_call_operand.hbm [shape: f32[2,8,8,32], index: 13, kind: output, shape index: {}]  }
   0x1   :  { %3077 = sst [smem:[#allocation21_spill]] %s3050_s0 }
   0x2   :  { %3078 = sst [smem:[#allocation22_spill]] %s3051_s1 }
   0x3   :  { %3079 = sst [smem:[#allocation23_spill]] %s3052_s2 }
   0x4   :  { %3080 = sst [smem:[#allocation24_spill]] %s3053_s3 }
   0x5   :  { %3081 = sst [smem:[#allocation25_spill]] %s3054_s4 }
   0x6   :  { %3082 = sst [smem:[#allocation26_spill]] %s3055_s5 }
   0x7   :  { %3083 = sst [smem:[#allocation27_spill]] %s3056_s6 }
   0x8   :  { %3084 = sst [smem:[#allocation28_spill]] %s3057_s7 }
   0x9   :  { %3085 = sst [smem:[#allocation29_spill]] %s3058_s8 }
   0xa   :  { %3086 = sst [smem:[#allocation30_spill]] %s3059_s9 }
   0xb   :  { %3087 = sst [smem:[#allocation31_spill]] %s3060_s10 }
   0xc   :  { %3088 = sst [smem:[#allocation32_spill]] %s3061_s11 }
   0xd   :  { %3089 = sst [smem:[#allocation33_spill]] %s3062_s12 }
   0xe   :  { %3090 = sst [smem:[#allocation34_spill]] %s3063_s13 }
   0xf   :  { %18 = vsyncpa [#allocation5], 0 }
  0x10   :  { %20 = vsyncpa [#allocation5 + $0x1], 0 }
  0x11   :  { %21 = vsyncpa [#allocation8], 0 }
  0x12   :  { %23 = vsyncpa [#allocation8 + $0x1], 0 }
  0x13   :  { %24 = vsyncpa [#allocation6], 0 }
  0x14   :  { %26 = vsyncpa [#allocation6 + $0x1], 0  ;;  %s2346_s25 = smov 0   ;;  %s2348_s26 = smov 0  }
  0x15   :  { %s2350_s27 = smov 0   ;;  %s2352_s28 = smov 0  }
  0x16   :  { %s2354_s29 = smov 0   ;;  %s2356_s30 = smov 0  }
  0x17   :  { %s2358_s14 = smov 0   ;;  %s2360_s15 = smov 0  }
  0x18   :  { %s2362_s16 = smov 0   ;;  %s2364_s17 = smov 0  }
  0x19   :  { %s2366_s18 = smov 0  }
  0x1a LB: > { %3091 = sst [smem:[#allocation13_spill]] %s2236_s28  ;;  %s1810_s19 = sadd.s32 4294967295, %s2264_s18   ;;  %s2264_s18 = sphi %s2366_s18, %s32_s18   ;;  %s2260_s17 = sphi %s2364_s17, %s3139_s17   ;;  %s2256_s16 = sphi %s2362_s16, %s3138_s16   ;;  %s2252_s15 = sphi %s2360_s15, %s3137_s15   ;;  %s2248_s14 = sphi %s2358_s14, %s3136_s14   ;;  %s2244_s30 = sphi %s2356_s30, %s3145_s30   ;;  %s2240_s29 = sphi %s2354_s29, %s3144_s29   ;;  %s2236_s28 = sphi %s2352_s28, %s3143_s28   ;;  %s2232_s27 = sphi %s2350_s27, %s3142_s27   ;;  %s2228_s26 = sphi %s2348_s26, %s3141_s26   ;;  %s2224_s25 = sphi %s2346_s25, %s3140_s25  }
  0x1b   : > { %3092 = sst [smem:[#allocation14_spill]] %s2248_s14  ;;  %s1811_s20 = sadd.s32 4294967294, %s2264_s18  }
  0x1c   : > { %3093 = sst [smem:[#allocation15_spill]] %s2256_s16  ;;  %p76_p0 = scmp.ne.s32.totalorder %s2244_s30, %s2240_s29 }
  0x1d   : > { %3094 = sst [smem:[#allocation16_spill]] %s2260_s17  ;;  %p77_p1 = scmp.eq.s32.totalorder %s2264_s18, 0 }
  0x1e   : > { %p82_p2 = scmp.ne.s32.totalorder %s2240_s29, %s2236_s28  ;;  %p2410_p3 = scmp.eq.s32.totalorder %s1810_s19, 0 }
  0x1f   : > { %p2416_p4 = por %p77_p1, %p76_p0  ;;  %p409_p5 = scmp.eq.s32.totalorder %s1810_s19, 3 }
  0x20   : > { %p2422_p6 = por %p2410_p3, %p82_p2  ;;  %p415_p7 = scmp.eq.s32.totalorder %s1811_s20, 3 }
  0x21   : > { %p2426_p8 = por %p409_p5, %p76_p0  ;;  %p1935_p10 = scmp.lt.s32.totalorder %s2264_s18, 4 }
  0x22   : > { %p2430_p9 = por %p415_p7, %p82_p2  ;;  %s456_s13 = sand.u32 1, %s2244_s30  }
  0x23   : > { %s3098_s21 = scalar_select %p2426_p8, 1, 0 }
  0x24   : > { %s3100_s28 = scalar_select %p2430_p9, 1, 0 }
  0x25   : > { %3099 = sst [smem:[#allocation17_spill]] %s3098_s21  ;;  %s1864_s12 = sshll.u32 %s2260_s17, 6 }
  0x26   : > { %3101 = sst [smem:[#allocation18_spill]] %s3100_s28  ;;  %s1814_s19 = sshll.u32 %s456_s13, 6 }
  0x27   : > { %s3102_s0 = sld [smem:[#allocation21_spill]]  ;;  %s460_s20 = scalar_lea.vmem [#allocation4], %s1814_s19 }
  0x28   : > { %s471_s21 = sshll.u32 %s460_s20, 4  ;;  %p1925_p11 = pnand %p1935_p10, %p2416_p4  ;;  %s472_s21 = int_to_ptr.vmem [resolvable:$true] %s471_s21 }
  0x29   : > { %p1821_p12 = scmp.ge.s32.totalorder %s2264_s18, 1  ;;  %p562_p13 = scmp.lt.s32.totalorder %s2264_s18, 5 }
  0x2a   : > { %s457_s10 = scalar_lea.sflag [#allocation5], %s456_s13  ;;  %s2267_s11 = smov 8  }
  0x2b   : > { %p2446_p0 = pnand %p1821_p12, %p562_p13  ;;  %s47_s19 = sadd.s32 1, %s2256_s16 }
  0x2c   : > { %p48_p2 = scmp.ge.s32.totalorder %s47_s19, 2  ;;  %s101_s24 = sadd.s32 1, %s2232_s27 }
  0x2d   : > { %s468_s9 = scalar_lea.hbm %s3102_s0, %s1864_s12  ;;  %p108_p5 = scmp.ne.s32.totalorder %s2232_s27, %s2228_s26 }
  0x2e   : > { %s469_s7 = sshll.u32 %s468_s9, 4  ;;  %s2266_s9 = smov 128   ;;  %s470_s7 = int_to_ptr.hbm [resolvable:$true] %s469_s7 }
  0x2f   : > { %1927 = dma.hbm_to_vmem [thread:$0]  (!%p1925_p11), %s470_s7, 1024, %s472_s21, %s457_s10, %s2266_s9, %s2266_s9, %s2267_s11  }
  0x30   : > { %p114_p4 = scmp.ne.s32.totalorder %s2228_s26, %s2224_s25  ;;  %s3147_s19 = smov (%p48_p2, %s47_s19), 0 }
  0x31   : > { %3104 = sst [smem:[#allocation19_spill]] %s3147_s19  ;;  %s3105_s13 = sadd.s32 1, %s2260_s17 }
  0x32   : > { %s3149_s13 = smov (!%p48_p2, %s3105_s13), %s2260_s17  ;;  %s93_s7 = ssub.s32 %s2256_s16, %s3147_s19 }
  0x33   : > { %p2465_p7 = por %p108_p5, %p77_p1  ;;  %p60_p11 = scmp.ge.s32.totalorder %s3149_s13, 2 }
  0x34   : > { %p2471_p12 = por %p114_p4, %p2410_p3  ;;  %s481_s25 = sand.u32 1, %s2232_s27  }
  0x35   : > { %s1818_s10 = sshll.u32 %s2256_s16, 3  ;;  %s3151_s13 = smov (%p60_p11, %s3149_s13), 0 }
  0x36   : > { %3108 = sst [smem:[#allocation20_spill]] %s3151_s13  ;;  %s1817_s9 = sshll.u32 %s481_s25, 5 }
  0x37   : > { %s62_s11 = ssub.s32 %s2260_s17, %s3151_s13  ;;  %s1819_s19 = sshll.u32 %s2260_s17, 4 }
  0x38   : > { %p67_p13 = scmp.eq.s32.totalorder %s62_s11, 0  ;;  %s94_s0 = sor.u32 %s93_s7, %s62_s11 }
  0x39   : > { %p99_p1 = scmp.eq.s32.totalorder %s94_s0, 0  ;;  %s3109_s28 = sadd.s32 1, %s2244_s30 }
  0x3a   : > { %s2485_s6 = scalar_select %p67_p13, %s2244_s30, %s3109_s28  }
  0x3b   : > { %s2488_s23 = scalar_select %p99_p1, %s2232_s27, %s101_s24  }
  0x3c   : > { %s493_s8 = sadd.s32 %s1819_s19, %s1818_s10  ;;  %s485_s5 = scalar_lea.vmem [#allocation7], %s1817_s9 }
  0x3d   : > { %s498_s4 = sshll.u32 %s485_s5, 4  ;;  %s1820_s16 = sshll.u32 %s493_s8, 2  ;;  %s499_s4 = int_to_ptr.vmem [resolvable:$true] %s498_s4 }
  0x3e   : > { %s3110_s1 = sld [smem:[#allocation22_spill]]  ;;  %p1928_p3 = pnand %p1935_p10, %p2465_p7 }
  0x3f   : > { %s482_s0 = scalar_lea.sflag [#allocation8], %s481_s25  ;;  %s2268_s11 = smov 64  }
  0x40   : > { %s2269_s28 = smov 4   ;;  %s2500_s5 = sand.u32 (!%p2446_p0), 1, %s2240_s29  }
  0x41   : > { %s1822_s2 = sshll.u32 (!%p2446_p0), %s2500_s5, 6  ;;  %s569_s3 = scalar_lea.sflag (!%p2446_p0), [#allocation5], %s2500_s5 }
  0x42   : > { %566 = sbr.rel (%p2446_p0) target bundleno = 1124 (0x464), region = 72  ;;  %s2504_s8 = scalar_lea.vmem (!%p2446_p0), [#allocation4], %s1822_s2 }
  0x44   : > { %s495_s14 = scalar_lea.hbm %s3110_s1, %s1820_s16 }
  0x45   : > { %s496_s7 = sshll.u32 %s495_s14, 4  ;;  %s497_s7 = int_to_ptr.hbm [resolvable:$true] %s496_s7 }
  0x46   : > { %1930 = dma.hbm_to_vmem [thread:$0]  (!%p1928_p3), %s497_s7, 512, %s499_s4, %s482_s0, %s2268_s11, %s2268_s11, %s2269_s28  }
  0x47   : > { %2211 = dma.done.wait (%p2422_p6), %s569_s3, 1024  }
  0x48   : > { %2213 = vsyncadd (%p2422_p6), %s569_s3, 4294966272  ;;  %s578_s4 = sand.u32 1, %s2228_s26  }
  0x49   : > { %s1823_s14 = sshll.u32 %s578_s4, 5  ;;  %s579_s16 = scalar_lea.sflag [#allocation8], %s578_s4 }
  0x4a   : > { %s2511_s12 = scalar_lea.vmem [#allocation7], %s1823_s14 }
  0x4b   : > { %2215 = dma.done.wait (%p2471_p12), %s579_s16, 512  }
  0x4c   : > { %2217 = vsyncadd (%p2471_p12), %s579_s16, 4294966784  ;;  %s3111_s19 = sld [smem:[#allocation14_spill]]  ;;  %p677_p10 = scmp.lt.s32.totalorder %s2252_s15, 1 }
  0x4d   : > { %s3112_s0 = sld [smem:[#allocation23_spill]]  ;;  %s2539_s17 = scalar_lea.vmem [#allocation9], %s1822_s2 }
  0x4e   : > { %s678_s22 = scalar_select %p677_p10, %s2252_s15, 1 }
  0x4f   : > { %s3113_s3 = sld [smem:[#allocation24_spill]] }
  0x50   : > { %s1825_s21 = sshll.u32 %s678_s22, 1  ;;  %s3114_s1 = sld [smem:[#allocation25_spill]] }
  0x52   : > { %p679_p0 = scmp.lt.s32.totalorder %s3111_s19, 1  ;;  %p1833_p6 = scmp.ne.s32.totalorder %s3111_s19, 0 }
  0x53   : > { %s3119_s16 = sld [smem:[#allocation27_spill]] (!%p1833_p6) }
  0x54   : > { %s680_s24 = scalar_select %p679_p0, %s3111_s19, 1 }
  0x56   : > { %s685_s25 = sadd.s32 %s1825_s21, %s680_s24  ;;  %s3115_s21 = sld [smem:[#allocation26_spill]] }
  0x57   : > { %s2521_s10 = sshll.u32 %s685_s25, 3 }
  0x58   : > { %s687_s20 = scalar_lea.vmem %s3112_s0, %s2521_s10  ;;  %s698_s4 = scalar_lea.vmem %s3113_s3, %s2521_s10 }
  0x59   : > { %s709_s13 = scalar_lea.vmem %s3114_s1, %s2521_s10  ;;  %725 = sbr.rel (%p1833_p6) target bundleno = 514 (0x202), region = 84 }
  0x5c   : > { %s720_s25 = scalar_lea.vmem %s3115_s21, %s2521_s10  ;;  %s3120_s21 = sld [smem:[#allocation28_spill]] (!%p1833_p6) }
  0x5e   : > { %v731_v0 = vld [vmem:[%s2504_s8 + $0x28] sm:$0xff]  ;;  %vm734_vm0 = vcmask 261120   ;;  %v730_v1 = vld [vmem:[%s2504_s8 + $0x20] sm:$0xff]  ;;  %v733_v6 = vld [vmem:[%s2504_s8 + $0x38] sm:$0xff]  ;;  %v2270_v16 = vmov 32.0  }
  0x5f   : > { %v726_v2 = vld [vmem:[%s2504_s8] sm:$0xff]  ;;  %v750_v3 = vsel %vm734_vm0, %v731_v0, 0.0  ;;  %v747_v4 = vsel %vm734_vm0, %v730_v1, 0.0  ;;  %v732_v7 = vld [vmem:[%s2504_s8 + $0x30] sm:$0xff]  ;;  %v756_v9 = vsel %vm734_vm0, %v733_v6, 0.0  ;;  %v727_v12 = vld [vmem:[%s2504_s8 + $0x8] sm:$0xff]  ;;  %2037 = vrcp.f32 %v2270_v16 }
  0x60   : > { %v735_v5 = vsel %vm734_vm0, %v726_v2, 0.0  ;;  %751 = vadd.xlane.f32.xlu2 %v750_v3  ;;  %748 = vadd.xlane.f32.xlu0 %v747_v4  ;;  %v728_v8 = vld [vmem:[%s2504_s8 + $0x10] sm:$0xff]  ;;  %v753_v10 = vsel %vm734_vm0, %v732_v7, 0.0  ;;  %v729_v13 = vld [vmem:[%s2504_s8 + $0x18] sm:$0xff]  ;;  %v738_v14 = vsel %vm734_vm0, %v727_v12, 0.0  ;;  %s3116_s8 = sld [smem:[#allocation29_spill]] }
  0x61   : > { %736 = vadd.xlane.f32.xlu1 %v735_v5  ;;  %v741_v11 = vsel %vm734_vm0, %v728_v8, 0.0  ;;  %v744_v15 = vsel %vm734_vm0, %v729_v13, 0.0 }
  0x65   : > { %v2038_v17 = vpop.eup %2037 }
  0x66   : > { %v760_v18 = vmul.f32 32.0, %v2038_v17  ;;  %vm764_vm1 = vweird.f32 %v2038_v17  ;;  %v945_v63 = vld [vmem:[%s3116_s8 + $0x18] sm:$0xff] }
  0x67   : > { %982 = vmatpush.msra.mxu0 %v945_v63  ;;  %1886 = vmatpush.msra.mxu2 %v945_v63 }
  0x68   : > { %757 = vadd.xlane.f32.xlu2 %v756_v9  ;;  %754 = vadd.xlane.f32.xlu0 %v753_v10  ;;  %v761_v19 = vsub.f32 1.0, %v760_v18 }
  0x69   : > { %742 = vadd.xlane.f32.xlu1 %v741_v11  ;;  %1885 = vmatpush.msra.mxu1 %v945_v63 }
  0x6a   : > { %v762_v20 = vmul.f32 %v2038_v17, %v761_v19  ;;  %1887 = vmatpush.msra.mxu3 %v945_v63  ;;  %v2668_v63 = vld [vmem:[%s3120_s21] ss:$0 sm:$0xff] }
  0x6c   : > { %v763_v21 = vadd.f32 %v2038_v17, %v762_v20 }
  0x6e   : > { %v2558_v22 = vsel %vm764_vm1, %v2038_v17, %v763_v21 }
  0x70   : > { %739 = vadd.xlane.f32.xlu0 %v738_v14 }
  0x71   : > { %745 = vadd.xlane.f32.xlu1 %v744_v15 }
  0xd3   : > { %v752_v23 = vpop.xlane.xlu2 %751  ;;  %v749_v24 = vpop.xlane.xlu0 %748 }
  0xd4   : > { %v770_v25 = vmul.f32 %v2558_v22, %v749_v24  ;;  %v737_v26 = vpop.xlane.xlu1 %736  ;;  %v771_v40 = vmul.f32 %v2558_v22, %v752_v23 }
  0xd5   : > { %v766_v27 = vmul.f32 %v2558_v22, %v737_v26 }
  0xd6   : > { %v2562_v28 = vsub.f32 %v730_v1, %v770_v25  ;;  %v2588_v47 = vsub.f32 %v731_v0, %v771_v40  ;;  %v944_v0 = vld [vmem:[%s3116_s8 + $0x10] sm:$0xff]  ;;  %v943_v1 = vld [vmem:[%s3116_s8 + $0x8] sm:$0xff] }
  0xd7   : > { %v2564_v29 = vsub.f32 %v726_v2, %v766_v27  ;;  %983 = vmatpush.msra.mxu0 %v944_v0  ;;  %1889 = vmatpush.msra.mxu2 %v944_v0  ;;  %v942_v2 = vld [vmem:[%s3116_s8] sm:$0xff] }
  0xd8   : > { %v786_v30 = vmul.f32 %v2562_v28, %v2562_v28  ;;  %v787_v56 = vmul.f32 %v2588_v47, %v2588_v47  ;;  %1888 = vmatpush.msra.mxu1 %v944_v0  ;;  %1890 = vmatpush.msra.mxu3 %v944_v0 }
  0xd9   : > { %v782_v31 = vmul.f32 %v2564_v29, %v2564_v29  ;;  %984 = vmatpush.msra.mxu0 %v943_v1  ;;  %1892 = vmatpush.msra.mxu2 %v943_v1 }
  0xda   : > { %v802_v32 = vsel %vm734_vm0, %v786_v30, 0.0  ;;  %v805_v59 = vsel %vm734_vm0, %v787_v56, 0.0  ;;  %1891 = vmatpush.msra.mxu1 %v943_v1  ;;  %1893 = vmatpush.msra.mxu3 %v943_v1 }
  0xdb   : > { %v758_v33 = vpop.xlane.xlu2 %757  ;;  %803 = vadd.xlane.f32.xlu2 %v802_v32  ;;  %v755_v34 = vpop.xlane.xlu0 %754  ;;  %v790_v35 = vsel %vm734_vm0, %v782_v31, 0.0  ;;  %985 = vmatpush.msra.mxu0 %v942_v2 }
  0xdc   : > { %v773_v36 = vmul.f32 %v2558_v22, %v758_v33  ;;  %v772_v37 = vmul.f32 %v2558_v22, %v755_v34  ;;  %791 = vadd.xlane.f32.xlu1 %v790_v35  ;;  %v743_v38 = vpop.xlane.xlu1 %742  ;;  %1895 = vmatpush.msra.mxu2 %v942_v2 }
  0xdd   : > { %v768_v39 = vmul.f32 %v2558_v22, %v743_v38  ;;  %1894 = vmatpush.msra.mxu1 %v942_v2  ;;  %1896 = vmatpush.msra.mxu3 %v942_v2 }
  0xde   : > { %v2576_v41 = vsub.f32 %v733_v6, %v773_v36  ;;  %v2578_v42 = vsub.f32 %v732_v7, %v772_v37 }
  0xdf   : > { %v2580_v43 = vsub.f32 %v728_v8, %v768_v39 }
  0xe0   : > { %v788_v44 = vmul.f32 %v2578_v42, %v2578_v42  ;;  %v789_v45 = vmul.f32 %v2576_v41, %v2576_v41 }
  0xe1   : > { %v784_v46 = vmul.f32 %v2580_v43, %v2580_v43 }
  0xe2   : > { %v808_v48 = vsel %vm734_vm0, %v788_v44, 0.0  ;;  %v811_v49 = vsel %vm734_vm0, %v789_v45, 0.0 }
  0xe3   : > { %809 = vadd.xlane.f32.xlu0 %v808_v48  ;;  %v740_v50 = vpop.xlane.xlu0 %739  ;;  %v796_v51 = vsel %vm734_vm0, %v784_v46, 0.0 }
  0xe4   : > { %v767_v52 = vmul.f32 %v2558_v22, %v740_v50  ;;  %812 = vadd.xlane.f32.xlu1 %v811_v49  ;;  %797 = vadd.xlane.f32.xlu2 %v796_v51  ;;  %v746_v53 = vpop.xlane.xlu1 %745 }
  0xe5   : > { %v769_v54 = vmul.f32 %v2558_v22, %v746_v53 }
  0xe6   : > { %v2595_v55 = vsub.f32 %v727_v12, %v767_v52  ;;  %v2656_v52 = vld [vmem:[%s3119_s16] ss:$0 sm:$0xff] }
  0xe7   : > { %v2601_v58 = vsub.f32 %v729_v13, %v769_v54 }
  0xe8   : > { %v783_v57 = vmul.f32 %v2595_v55, %v2595_v55 }
  0xe9   : > { %v785_v61 = vmul.f32 %v2601_v58, %v2601_v58 }
  0xea   : > { %v793_v60 = vsel %vm734_vm0, %v783_v57, 0.0 }
  0xeb   : > { %806 = vadd.xlane.f32.xlu0 %v805_v59  ;;  %v799_v62 = vsel %vm734_vm0, %v785_v61, 0.0 }
  0xec   : > { %794 = vadd.xlane.f32.xlu2 %v793_v60 }
  0xf3   : > { %800 = vadd.xlane.f32.xlu0 %v799_v62 }
 0x14e   : > { %v804_v3 = vpop.xlane.xlu2 %803 }
 0x14f   : > { %v818_v4 = vmul.f32 %v804_v3, %v2558_v22  ;;  %v792_v5 = vpop.xlane.xlu1 %791 }
 0x150   : > { %v814_v6 = vmul.f32 %v792_v5, %v2558_v22 }
 0x151   : > { %v826_v7 = vadd.f32 1e-05, %v818_v4 }
 0x152   : > { %v822_v8 = vadd.f32 1e-05, %v814_v6 }
 0x153   : > { %2039 = vrsqrt.f32 %v826_v7  ;;  %vm876_vm5 = vweird.f32 %v826_v7 }
 0x154   : > { %2041 = vrsqrt.f32 %v822_v8  ;;  %vm836_vm3 = vweird.f32 %v822_v8 }
 0x156   : > { %v810_v9 = vpop.xlane.xlu0 %809 }
 0x157   : > { %v820_v10 = vmul.f32 %v810_v9, %v2558_v22  ;;  %v798_v11 = vpop.xlane.xlu2 %797  ;;  %v813_v12 = vpop.xlane.xlu1 %812 }
 0x158   : > { %v816_v13 = vmul.f32 %v798_v11, %v2558_v22  ;;  %v821_v14 = vmul.f32 %v813_v12, %v2558_v22 }
 0x159   : > { %v2040_v15 = vpop.eup %2039  ;;  %v2625_v16 = vadd.f32 1e-05, %v820_v10 }
 0x15a   : > { %v2042_v17 = vpop.eup %2041  ;;  %v871_v18 = vmul.f32 %v2040_v15, %v826_v7  ;;  %v2627_v19 = vadd.f32 1e-05, %v816_v13  ;;  %v2629_v20 = vadd.f32 1e-05, %v821_v14  ;;  %vm877_vm2 = vweird.f32 %v2040_v15 }
 0x15b   : > { %v831_v21 = vmul.f32 %v2042_v17, %v822_v8  ;;  %2043 = vrsqrt.f32 %v2625_v16  ;;  %vm837_vm4 = vweird.f32 %v2042_v17  ;;  %vm2643_vm6 = vmor %vm876_vm5, %vm877_vm2  ;;  %vm896_vm8 = vweird.f32 %v2625_v16 }
 0x15c   : > { %v872_v23 = vmul.f32 %v2040_v15, %v871_v18  ;;  %2045 = vrsqrt.f32 %v2627_v19  ;;  %vm838_vm7 = vmor %vm836_vm3, %vm837_vm4  ;;  %vm856_vm9 = vweird.f32 %v2627_v19  ;;  %vm906_vm10 = vweird.f32 %v2629_v20 }
 0x15d   : > { %v832_v24 = vmul.f32 %v2042_v17, %v831_v21  ;;  %2047 = vrsqrt.f32 %v2629_v20 }
 0x15e   : > { %v873_v25 = vmul.f32 0.5, %v872_v23  ;;  %v807_v26 = vpop.xlane.xlu0 %806 }
 0x15f   : > { %v833_v27 = vmul.f32 0.5, %v832_v24  ;;  %v819_v30 = vmul.f32 %v807_v26, %v2558_v22  ;;  %v795_v31 = vpop.xlane.xlu2 %794 }
 0x160   : > { %v874_v32 = vsub.f32 1.5, %v873_v25  ;;  %v815_v33 = vmul.f32 %v795_v31, %v2558_v22 }
 0x161   : > { %v2044_v34 = vpop.eup %2043  ;;  %v834_v35 = vsub.f32 1.5, %v833_v27  ;;  %v2636_v36 = vadd.f32 1e-05, %v819_v30 }
 0x162   : > { %v2046_v37 = vpop.eup %2045  ;;  %v875_v38 = vmul.f32 %v2040_v15, %v874_v32  ;;  %v891_v39 = vmul.f32 %v2044_v34, %v2625_v16  ;;  %v2639_v40 = vadd.f32 1e-05, %v815_v33  ;;  %vm897_vm11 = vweird.f32 %v2044_v34 }
 0x163   : > { %v2641_v44 = vpop.eup %2047  ;;  %v835_v46 = vmul.f32 %v2042_v17, %v834_v35  ;;  %v851_v48 = vmul.f32 %v2046_v37, %v2627_v19  ;;  %2049 = vrsqrt.f32 %v2636_v36  ;;  %vm857_vm12 = vweird.f32 %v2046_v37  ;;  %vm898_vm14 = vmor %vm896_vm8, %vm897_vm11 }
 0x164   : > { %v879_v49 = vsel %vm2643_vm6, %v2040_v15, %v875_v38  ;;  %v892_v50 = vmul.f32 %v2044_v34, %v891_v39  ;;  %v901_v51 = vmul.f32 %v2641_v44, %v2629_v20  ;;  %2051 = vrsqrt.f32 %v2639_v40  ;;  %vm858_vm15 = vmor %vm856_vm9, %vm857_vm12 }
 0x165   : > { %v839_v53 = vsel %vm838_vm7, %v2042_v17, %v835_v46  ;;  %v852_v54 = vmul.f32 %v2046_v37, %v851_v48  ;;  %v914_v0 = vmul.f32 %v879_v49, %v2562_v28  ;;  %vm907_vm13 = vweird.f32 %v2641_v44 }
 0x166   : > { %v893_v56 = vmul.f32 0.5, %v892_v50  ;;  %v902_v57 = vmul.f32 %v2641_v44, %v901_v51  ;;  %v801_v59 = vpop.xlane.xlu0 %800  ;;  %v910_v60 = vmul.f32 %v839_v53, %v2564_v29  ;;  %vm2684_vm1 = vmor %vm906_vm10, %vm907_vm13  ;;  %vm886_vm3 = vweird.f32 %v2636_v36 }
 0x167   : > { %v853_v61 = vmul.f32 0.5, %v852_v54  ;;  %v817_v62 = vmul.f32 %v801_v59, %v2558_v22  ;;  %v926_v6 = vmul.f32 %v2656_v52, %v914_v0  ;;  %vm846_vm4 = vweird.f32 %v2639_v40 }
 0x168   : > { %v894_v1 = vsub.f32 1.5, %v893_v56  ;;  %v903_v2 = vmul.f32 0.5, %v902_v57  ;;  %v922_v3 = vmul.f32 %v2656_v52, %v910_v60  ;;  %vm1011_vm11 = vcmask 130048  }
 0x169   : > { %v2050_v4 = vpop.eup %2049  ;;  %v854_v5 = vsub.f32 1.5, %v853_v61  ;;  %v825_v29 = vadd.f32 1e-05, %v817_v62  ;;  %v938_v16 = vadd.f32 %v2668_v63, %v926_v6  ;;  %v2271_v57 = vmov 0.0  }
 0x16a   : > { %v895_v7 = vmul.f32 %v2044_v34, %v894_v1  ;;  %v904_v22 = vsub.f32 1.5, %v903_v2  ;;  %v881_v8 = vmul.f32 %v2050_v4, %v2636_v36  ;;  %v2052_v9 = vpop.eup %2051  ;;  %v934_v10 = vadd.f32 %v2668_v63, %v922_v3  ;;  %1020 = vst.msk [vmem:[#allocation3] sm:$0xff] %vm1011_vm11, %v2271_v57 }
 0x16b   : > { %v855_v28 = vmul.f32 %v2046_v37, %v854_v5  ;;  %2053 = vrsqrt.f32 %v825_v29  ;;  %v841_v14 = vmul.f32 %v2052_v9, %v2639_v40  ;;  %1838 = vmatmul.msk.f32.vlgmr.msra.gmra.mxu2 %vm734_vm0, %v938_v16  ;;  %vm887_vm2 = vweird.f32 %v2050_v4  ;;  %1021 = vst.msk [vmem:[#allocation3 + $0x8] sm:$0xff] %vm1011_vm11, %v2271_v57 }
 0x16c   : > { %v899_v11 = vsel %vm898_vm14, %v2044_v34, %v895_v7  ;;  %v905_v12 = vmul.f32 %v2641_v44, %v904_v22  ;;  %v882_v13 = vmul.f32 %v2050_v4, %v881_v8  ;;  %1834 = vmatmul.msk.f32.vlgmr.msra.gmra.mxu0 %vm734_vm0, %v934_v10  ;;  %vm847_vm5 = vweird.f32 %v2052_v9  ;;  %vm888_vm6 = vmor %vm886_vm3, %vm887_vm2  ;;  %1022 = vst.msk [vmem:[#allocation3 + $0x10] sm:$0xff] %vm1011_vm11, %v2271_v57 }
 0x16d   : > { %v859_v15 = vsel %vm858_vm15, %v2046_v37, %v855_v28  ;;  %v916_v18 = vmul.f32 %v899_v11, %v2578_v42  ;;  %v842_v23 = vmul.f32 %v2052_v9, %v841_v14  ;;  %vm848_vm7 = vmor %vm846_vm4, %vm847_vm5  ;;  %vm866_vm9 = vweird.f32 %v825_v29  ;;  %1023 = vst.msk [vmem:[#allocation3 + $0x18] sm:$0xff] %vm1011_vm11, %v2271_v57 }
 0x16e   : > { %v909_v19 = vsel %vm2684_vm1, %v2641_v44, %v905_v12  ;;  %v883_v21 = vmul.f32 0.5, %v882_v13  ;;  %v912_v24 = vmul.f32 %v859_v15, %v2580_v43  ;;  %1024 = vst.msk [vmem:[#allocation3 + $0x20] sm:$0xff] %vm1011_vm11, %v2271_v57 }
 0x16f   : > { %v928_v20 = vmul.f32 %v2656_v52, %v916_v18  ;;  %v843_v26 = vmul.f32 0.5, %v842_v23  ;;  %v917_v31 = vmul.f32 %v909_v19, %v2576_v41  ;;  %1025 = vst.msk [vmem:[#allocation3 + $0x28] sm:$0xff] %vm1011_vm11, %v2271_v57 }
 0x170   : > { %v884_v25 = vsub.f32 1.5, %v883_v21  ;;  %v924_v27 = vmul.f32 %v2656_v52, %v912_v24  ;;  %1026 = vst.msk [vmem:[#allocation3 + $0x30] sm:$0xff] %vm1011_vm11, %v2271_v57 }
 0x171   : > { %v2054_v30 = vpop.eup %2053  ;;  %v940_v42 = vadd.f32 %v2668_v63, %v928_v20  ;;  %v844_v43 = vsub.f32 1.5, %v843_v26  ;;  %v929_v39 = vmul.f32 %v2656_v52, %v917_v31  ;;  %1027 = vst.msk [vmem:[#allocation3 + $0x38] sm:$0xff] %vm1011_vm11, %v2271_v57 }
 0x172   : > { %v885_v32 = vmul.f32 %v2050_v4, %v884_v25  ;;  %v861_v33 = vmul.f32 %v2054_v30, %v825_v29  ;;  %v936_v34 = vadd.f32 %v2668_v63, %v924_v27  ;;  %vm867_vm8 = vweird.f32 %v2054_v30 }
 0x173   : > { %1840 = vmatmul.msk.f32.vlgmr.msra.gmra.mxu3 %vm734_vm0, %v940_v42  ;;  %v845_v37 = vmul.f32 %v2052_v9, %v844_v43  ;;  %v941_v50 = vadd.f32 %v2668_v63, %v929_v39  ;;  %vm868_vm10 = vmor %vm866_vm9, %vm867_vm8 }
 0x174   : > { %v889_v35 = vsel %vm888_vm6, %v2050_v4, %v885_v32  ;;  %v862_v38 = vmul.f32 %v2054_v30, %v861_v33  ;;  %1836 = vmatmul.msk.f32.vlgmr.msra.gmra.mxu1 %vm734_vm0, %v936_v34 }
 0x175   : > { %v915_v36 = vmul.f32 %v889_v35, %v2588_v47  ;;  %v849_v41 = vsel %vm848_vm7, %v2052_v9, %v845_v37 }
 0x176   : > { %v863_v40 = vmul.f32 0.5, %v862_v38  ;;  %v911_v44 = vmul.f32 %v849_v41, %v2595_v55 }
 0x177   : > { %v927_v45 = vmul.f32 %v2656_v52, %v915_v36 }
 0x178   : > { %v864_v46 = vsub.f32 1.5, %v863_v40  ;;  %v923_v48 = vmul.f32 %v2656_v52, %v911_v44 }
 0x179   : > { %v939_v49 = vadd.f32 %v2668_v63, %v927_v45 }
 0x17a   : > { %v865_v51 = vmul.f32 %v2054_v30, %v864_v46  ;;  %v935_v47 = vadd.f32 %v2668_v63, %v923_v48 }
 0x17b   : > { %1839 = vmatmul.msk.f32.gmra.mxu2 %vm734_vm0, %v939_v49  ;;  %1841 = vmatmul.msk.f32.gmra.mxu3 %vm734_vm0, %v941_v50 }
 0x17c   : > { %v869_v55 = vsel %vm868_vm10, %v2054_v30, %v865_v51  ;;  %1835 = vmatmul.msk.f32.gmra.mxu0 %vm734_vm0, %v935_v47 }
 0x17d   : > { %v913_v53 = vmul.f32 %v869_v55, %v2601_v58 }
 0x17f   : > { %v925_v54 = vmul.f32 %v2656_v52, %v913_v53 }
 0x181   : > { %v937_v56 = vadd.f32 %v2668_v63, %v925_v54 }
 0x183   : > { %1837 = vmatmul.msk.f32.gmra.mxu1 %vm734_vm0, %v937_v56 }
 0x1e9   : > { %v987_v58 = vpop.f32.mrf.mxu0 }
 0x1ea   : > { %1012 = vst.msk [vmem:[#allocation2] sm:$0xff] %vm1011_vm11, %v987_v58 }
 0x1ee   : > { %v999_v52 = vpop.f32.mrf.mxu2 }
 0x1ef   : > { %1016 = vst.msk [vmem:[#allocation2 + $0x20] sm:$0xff] %vm1011_vm11, %v999_v52 }
 0x1f1   : > { %v993_v59 = vpop.f32.mrf.mxu1 }
 0x1f2   : > { %1014 = vst.msk [vmem:[#allocation2 + $0x10] sm:$0xff] %vm1011_vm11, %v993_v59 }
 0x1f6   : > { %v1005_v60 = vpop.f32.mrf.mxu3 }
 0x1f7   : > { %1018 = vst.msk [vmem:[#allocation2 + $0x30] sm:$0xff] %vm1011_vm11, %v1005_v60 }
 0x1f9   : > { %v990_v61 = vpop.f32.mrf.mxu0 }
 0x1fa   : > { %1013 = vst.msk [vmem:[#allocation2 + $0x8] sm:$0xff] %vm1011_vm11, %v990_v61 }
 0x1fe   : > { %v1002_v62 = vpop.f32.mrf.mxu2  ;;  %v1008_v63 = vpop.f32.mrf.mxu3 }
 0x1ff   : > { %1017 = vst.msk [vmem:[#allocation2 + $0x28] sm:$0xff] %vm1011_vm11, %v1002_v62 }
 0x200   : > { %1019 = vst.msk [vmem:[#allocation2 + $0x38] sm:$0xff] %vm1011_vm11, %v1008_v63  ;;  %v996_v0 = vpop.f32.mrf.mxu1 }
 0x201   : > { %1015 = vst.msk [vmem:[#allocation2 + $0x18] sm:$0xff] %vm1011_vm11, %v996_v0 }
 0x202 PF: > { %s3123_s19 = sld [smem:[#allocation30_spill]]  ;;  %v1124_v2 = vld [vmem:[%s720_s25] sm:$0xff]  ;;  %v2272_v3 = vmov 0   ;;  %v1882_v9 = vld [vmem:[%s2511_s12 + $0x8] sm:$0xff]   ;;  %v1883_v28 = vld [vmem:[%s2511_s12 + $0x10] sm:$0xff]   ;;  %vm1049_vm0 = vcmask 326656  }
 0x203   : > { %2055 = vset.pattern.permute.xlu0 %v2272_v3  ;;  %v2752_v5 = vld [vmem:[%s709_s13] sm:$0xff]  ;;  %2056 = vset.pattern.permute.xlu1 %v2272_v3  ;;  %v1884_v12 = vld [vmem:[%s2511_s12 + $0x18] sm:$0xff]   ;;  %v1872_v17 = vunpack.c.l.bf16 %v1882_v9  ;;  %v1876_v16 = vunpack.c.l.bf16 %v1883_v28  ;;  %v1873_v27 = vunpack.c.h.bf16 %v1882_v9  ;;  %v1877_v30 = vunpack.c.h.bf16 %v1883_v28  ;;  %v1222_v53 = vld [vmem:[#allocation2 + $0x10] sm:$0xff]  ;;  %s3129_s14 = sld [smem:[#allocation32_spill]] }
 0x204   : > { %v1156_v29 = vrot.slane %v2752_v5, 1  ;;  %1143 = vperm.xlu0 %2055, %v1124_v2   ;;  %v1867_v8 = vld [vmem:[%s2511_s12] sm:$0xff]   ;;  %v1157_v10 = vrot.slane %v2752_v5, 2  ;;  %v1164_v13 = vperm.slane %v2752_v5, 0  ;;  %v1158_v15 = vrot.slane %v2752_v5, 3  ;;  %2057 = vset.pattern.permute.xlu2 %v2272_v3  ;;  %s3130_s16 = sld [smem:[#allocation14_spill]] }
 0x205   : > { %v1868_v14 = vunpack.c.l.bf16 %v1867_v8  ;;  %v1880_v18 = vunpack.c.l.bf16 %v1884_v12  ;;  %v1160_v21 = vrot.slane %v2752_v5, 5  ;;  %v1161_v24 = vrot.slane %v2752_v5, 6  ;;  %v1115_v37 = vld [vmem:[%s687_s20] sm:$0xff] }
 0x206   : > { %v1165_v7 = vperm.slane %v1156_v29, 0  ;;  %v1166_v19 = vperm.slane %v1157_v10, 0  ;;  %v1167_v23 = vperm.slane %v1158_v15, 0  ;;  %v1869_v25 = vunpack.c.h.bf16 %v1867_v8  ;;  %v2795_v41 = vld [vmem:[%s698_s4] sm:$0xff]  ;;  %s3128_s4 = sld [smem:[#allocation31_spill]] }
 0x207   : > { %v1169_v20 = vperm.slane %v1160_v21, 0  ;;  %v1159_v26 = vrot.slane %v2752_v5, 4  ;;  %v1881_v42 = vunpack.c.h.bf16 %v1884_v12  ;;  %v1170_v31 = vperm.slane %v1161_v24, 0  ;;  %v1220_v47 = vld [vmem:[#allocation2] sm:$0xff] }
 0x208   : > { %v1048_v1 = vld [vmem:[%s3123_s19 + $0x20] sm:$0xff]  ;;  %v1047_v4 = vld [vmem:[%s3123_s19 + $0x18] sm:$0xff]  ;;  %v1046_v6 = vld [vmem:[%s3123_s19 + $0x10] sm:$0xff]  ;;  %1177 = vperm.xlu1 %2056, %v1165_v7   ;;  %1185 = vperm.xlu2 %2057, %v1167_v23   ;;  %v1162_v43 = vrot.slane %v2752_v5, 7  ;;  %v1118_v36 = vrot.slane %v1115_v37, 2  ;;  %v1125_v39 = vperm.slane %v1115_v37, 0 }
 0x209   : > { %1085 = vmatpush.msra.mxu0 %v1048_v1  ;;  %1897 = vmatpush.msra.mxu1 %v1048_v1  ;;  %v1045_v22 = vld [vmem:[%s3123_s19 + $0x8] sm:$0xff]  ;;  %v1044_v11 = vld [vmem:[%s3123_s19] sm:$0xff]  ;;  %v1168_v32 = vperm.slane %v1159_v26, 0  ;;  %v1120_v45 = vrot.slane %v1115_v37, 4  ;;  %v1117_v48 = vrot.slane %v1115_v37, 1  ;;  %v1119_v55 = vrot.slane %v1115_v37, 3 }
 0x20a   : > { %1898 = vmatpush.msra.mxu2 %v1048_v1  ;;  %1899 = vmatpush.msra.mxu3 %v1048_v1  ;;  %v1171_v33 = vperm.slane %v1162_v43, 0  ;;  %v1127_v46 = vperm.slane %v1118_v36, 0  ;;  %vm1244_vm12 = vcmask 130048   ;;  %v1121_v7 = vrot.slane %v1115_v37, 5  ;;  %v1223_v15 = vld [vmem:[#allocation2 + $0x18] sm:$0xff]  ;;  %v1226_v43 = vld [vmem:[#allocation2 + $0x30] sm:$0xff] }
 0x20b   : > { %1086 = vmatpush.msra.mxu0 %v1047_v4  ;;  %1900 = vmatpush.msra.mxu1 %v1047_v4  ;;  %v1129_v56 = vperm.slane %v1120_v45, 0  ;;  %v1126_v52 = vperm.slane %v1117_v48, 0  ;;  %v1128_v0 = vperm.slane %v1119_v55, 0  ;;  %v1122_v28 = vrot.slane %v1115_v37, 6  ;;  %p1850_p2 = scmp.ne.s32.totalorder %s3130_s16, 1 }
 0x20c   : > { %1901 = vmatpush.msra.mxu2 %v1047_v4  ;;  %1902 = vmatpush.msra.mxu3 %v1047_v4  ;;  %v1123_v4 = vrot.slane %v1115_v37, 7  ;;  %v1130_v24 = vperm.slane %v1121_v7, 0  ;;  %s3131_s13 = sld [smem:[#allocation33_spill]] (!%p1850_p2) }
 0x20d   : > { %1087 = vmatpush.msra.mxu0 %v1046_v6  ;;  %1903 = vmatpush.msra.mxu1 %v1046_v6 }
 0x20e   : > { %1904 = vmatpush.msra.mxu2 %v1046_v6  ;;  %1905 = vmatpush.msra.mxu3 %v1046_v6  ;;  %v1132_v23 = vperm.slane %v1123_v4, 0 }
 0x20f   : > { %1088 = vmatpush.msra.mxu0 %v1045_v22  ;;  %1906 = vmatpush.msra.mxu1 %v1045_v22 }
 0x210   : > { %1907 = vmatpush.msra.mxu2 %v1045_v22  ;;  %1908 = vmatpush.msra.mxu3 %v1045_v22  ;;  %v1224_v22 = vld [vmem:[#allocation2 + $0x20] sm:$0xff] }
 0x211   : > { %1089 = vmatpush.msra.mxu0 %v1044_v11  ;;  %1909 = vmatpush.msra.mxu1 %v1044_v11 }
 0x212   : > { %1910 = vmatpush.msra.mxu2 %v1044_v11  ;;  %1911 = vmatpush.msra.mxu3 %v1044_v11  ;;  %v1221_v11 = vld [vmem:[#allocation2 + $0x8] sm:$0xff] }
 0x213   : > { %1173 = vperm.xlu0 %2055, %v1164_v13   ;;  %1842 = vmatmul.msk.f32.vlgmr.msra.gmra.mxu0 %vm1049_vm0, %v1868_v14 }
 0x214   : > { %1844 = vmatmul.msk.f32.vlgmr.msra.gmra.mxu1 %vm1049_vm0, %v1872_v17  ;;  %1846 = vmatmul.msk.f32.vlgmr.msra.gmra.mxu2 %vm1049_vm0, %v1876_v16 }
 0x215   : > { %1848 = vmatmul.msk.f32.vlgmr.msra.gmra.mxu3 %vm1049_vm0, %v1880_v18  ;;  %1181 = vperm.xlu1 %2056, %v1166_v19  }
 0x216   : > { %1189 = vperm.xlu2 %2057, %v1168_v32  }
 0x21b   : > { %1193 = vperm.xlu0 %2055, %v1169_v20   ;;  %1843 = vmatmul.msk.f32.gmra.mxu0 %vm1049_vm0, %v1869_v25 }
 0x21c   : > { %1845 = vmatmul.msk.f32.gmra.mxu1 %vm1049_vm0, %v1873_v27  ;;  %1847 = vmatmul.msk.f32.gmra.mxu2 %vm1049_vm0, %v1877_v30  ;;  %v1131_v30 = vperm.slane %v1122_v28, 0 }
 0x21d   : > { %1849 = vmatmul.msk.f32.gmra.mxu3 %vm1049_vm0, %v1881_v42  ;;  %1197 = vperm.xlu1 %2056, %v1170_v31  }
 0x21e   : > { %1201 = vperm.xlu2 %2057, %v1171_v33  }
 0x262   : > { %v1186_v38 = vpop.permute.xlu2 %1185 }
 0x263   : > { %v1207_v9 = vmul.f32 %v1186_v38, %v2795_v41 }
 0x270   : > { %v1190_v54 = vpop.permute.xlu2 %1189 }
 0x271   : > { %v1208_v3 = vmul.f32 %v1190_v54, %v2795_v41 }
 0x276   : > { %v2783_v34 = vpop.permute.xlu0 %1143 }
 0x277   : > { %v1146_v49 = vmul.f32 %v2783_v34, %v1125_v39  ;;  %v1148_v57 = vmul.f32 %v2783_v34, %v1127_v46  ;;  %v1150_v2 = vmul.f32 %v2783_v34, %v1129_v56  ;;  %v1147_v29 = vmul.f32 %v2783_v34, %v1126_v52 }
 0x278   : > { %v1149_v12 = vmul.f32 %v2783_v34, %v1128_v0  ;;  %v1202_v27 = vpop.permute.xlu2 %1201  ;;  %v1153_v36 = vmul.f32 %v2783_v34, %v1132_v23  ;;  %v1151_v46 = vmul.f32 %v2783_v34, %v1130_v24  ;;  %v1152_v48 = vmul.f32 %v2783_v34, %v1131_v30 }
 0x279   : > { %v1216_v17 = vadd.f32 %v1208_v3, %v1150_v2  ;;  %v1211_v39 = vmul.f32 %v1202_v27, %v2795_v41 }
 0x27a   : > { %v1178_v35 = vpop.permute.xlu1 %1177  ;;  %v1215_v31 = vadd.f32 %v1207_v9, %v1149_v12 }
 0x27b   : > { %v1205_v6 = vmul.f32 %v1178_v35, %v2795_v41  ;;  %v1219_v56 = vadd.f32 %v1211_v39, %v1153_v36 }
 0x27d   : > { %v1213_v21 = vadd.f32 %v1205_v6, %v1147_v29 }
 0x285   : > { %v1174_v40 = vpop.permute.xlu0 %1173 }
 0x286   : > { %v1204_v50 = vmul.f32 %v1174_v40, %v2795_v41  ;;  %v1225_v40 = vld [vmem:[#allocation2 + $0x28] sm:$0xff] }
 0x287   : > { %v1182_v44 = vpop.permute.xlu1 %1181 }
 0x288   : > { %v1206_v51 = vmul.f32 %v1182_v44, %v2795_v41  ;;  %v1212_v59 = vadd.f32 %v1204_v50, %v1146_v49  ;;  %v1227_v50 = vld [vmem:[#allocation2 + $0x38] sm:$0xff] }
 0x28a   : > { %v1214_v62 = vadd.f32 %v1206_v51, %v1148_v57 }
 0x28d   : > { %v1194_v13 = vpop.permute.xlu0 %1193 }
 0x28e   : > { %v1209_v35 = vmul.f32 %v1194_v13, %v2795_v41 }
 0x28f   : > { %v1198_v20 = vpop.permute.xlu1 %1197 }
 0x290   : > { %v1091_v58 = vpop.f32.mrf.mxu0  ;;  %v1210_v37 = vmul.f32 %v1198_v20, %v2795_v41  ;;  %v1217_v55 = vadd.f32 %v1209_v35, %v1151_v46 }
 0x291   : > { %v1228_v60 = vadd.f32 %v1220_v47, %v1091_v58  ;;  %v1097_v61 = vpop.f32.mrf.mxu1 }
 0x292   : > { %v1230_v63 = vadd.f32 %v1222_v53, %v1097_v61  ;;  %v1218_v41 = vadd.f32 %v1210_v37, %v1152_v48 }
 0x293   : > { %v2801_v1 = vadd.f32 %v1228_v60, %v1212_v59 }
 0x294   : > { %v2805_v5 = vadd.f32 %v1230_v63, %v1214_v62  ;;  %v2273_v62 = vmov 16.0  }
 0x295   : > { %v1245_v8 = vsel %vm1244_vm12, %v2801_v1, 0.0  ;;  %2060 = vrcp.f32 %v2273_v62 }
 0x296   : > { %v1251_v10 = vsel %vm1244_vm12, %v2805_v5, 0.0  ;;  %1246 = vadd.xlane.f32.xlu0 %v1245_v8 }
 0x297   : > { %v1103_v14 = vpop.f32.mrf.mxu2  ;;  %1252 = vadd.xlane.f32.xlu2 %v1251_v10 }
 0x298   : > { %v1232_v16 = vadd.f32 %v1224_v22, %v1103_v14  ;;  %v1109_v18 = vpop.f32.mrf.mxu3  ;;  %v1094_v19 = vpop.f32.mrf.mxu0 }
 0x299   : > { %v1229_v25 = vadd.f32 %v1221_v11, %v1094_v19  ;;  %v1100_v26 = vpop.f32.mrf.mxu1  ;;  %v1234_v49 = vadd.f32 %v1226_v43, %v1109_v18 }
 0x29a   : > { %v1231_v42 = vadd.f32 %v1223_v15, %v1100_v26  ;;  %v1240_v32 = vadd.f32 %v1232_v16, %v1216_v17 }
 0x29b   : > { %v2815_v33 = vadd.f32 %v1229_v25, %v1213_v21  ;;  %v1242_v58 = vadd.f32 %v1234_v49, %v1218_v41  ;;  %v2061_v63 = vpop.eup %2060 }
 0x29c   : > { %v1239_v38 = vadd.f32 %v1231_v42, %v1215_v31  ;;  %v1257_v44 = vsel %vm1244_vm12, %v1240_v32, 0.0  ;;  %v1270_v0 = vmul.f32 16.0, %v2061_v63  ;;  %vm1274_vm13 = vweird.f32 %v2061_v63 }
 0x29d   : > { %v1248_v45 = vsel %vm1244_vm12, %v2815_v33, 0.0  ;;  %v1263_v61 = vsel %vm1244_vm12, %v1242_v58, 0.0 }
 0x29e   : > { %v1254_v51 = vsel %vm1244_vm12, %v1239_v38, 0.0  ;;  %1258 = vadd.xlane.f32.xlu0 %v1257_v44  ;;  %1249 = vadd.xlane.f32.xlu1 %v1248_v45  ;;  %v1271_v2 = vsub.f32 1.0, %v1270_v0 }
 0x29f   : > { %v1106_v47 = vpop.f32.mrf.mxu2  ;;  %1255 = vadd.xlane.f32.xlu2 %v1254_v51 }
 0x2a0   : > { %v1233_v53 = vadd.f32 %v1225_v40, %v1106_v47  ;;  %v1112_v54 = vpop.f32.mrf.mxu3  ;;  %v1272_v3 = vmul.f32 %v2061_v63, %v1271_v2 }
 0x2a1   : > { %v1235_v57 = vadd.f32 %v1227_v50, %v1112_v54 }
 0x2a2   : > { %v1241_v52 = vadd.f32 %v1233_v53, %v1217_v55  ;;  %v1273_v4 = vadd.f32 %v2061_v63, %v1272_v3 }
 0x2a3   : > { %v1243_v59 = vadd.f32 %v1235_v57, %v1219_v56 }
 0x2a4   : > { %v1260_v34 = vsel %vm1244_vm12, %v1241_v52, 0.0  ;;  %v2830_v29 = vsel %vm1274_vm13, %v2061_v63, %v1273_v4 }
 0x2a5   : > { %v1266_v60 = vsel %vm1244_vm12, %v1243_v59, 0.0 }
 0x2a6   : > { %1267 = vadd.xlane.f32.xlu0 %v1266_v60  ;;  %1261 = vadd.xlane.f32.xlu1 %v1260_v34 }
 0x2a7   : > { %1264 = vadd.xlane.f32.xlu2 %v1263_v61 }
 0x309   : > { %v1247_v6 = vpop.xlane.xlu0 %1246 }
 0x30a   : > { %v1253_v7 = vpop.xlane.xlu2 %1252  ;;  %v1276_v22 = vmul.f32 %v2830_v29, %v1247_v6 }
 0x30b   : > { %v1278_v8 = vmul.f32 %v2830_v29, %v1253_v7 }
 0x30c   : > { %v2835_v9 = vsub.f32 %v2801_v1, %v1276_v22 }
 0x30d   : > { %v2838_v28 = vsub.f32 %v2805_v5, %v1278_v8 }
 0x30e   : > { %v1292_v10 = vmul.f32 %v2835_v9, %v2835_v9 }
 0x30f   : > { %v1294_v11 = vmul.f32 %v2838_v28, %v2838_v28 }
 0x310   : > { %v1300_v12 = vsel %vm1244_vm12, %v1292_v10, 0.0 }
 0x311   : > { %v1306_v13 = vsel %vm1244_vm12, %v1294_v11, 0.0  ;;  %v1259_v14 = vpop.xlane.xlu0 %1258  ;;  %1301 = vadd.xlane.f32.xlu1 %v1300_v12  ;;  %v1250_v15 = vpop.xlane.xlu1 %1249 }
 0x312   : > { %v1256_v17 = vpop.xlane.xlu2 %1255  ;;  %1307 = vadd.xlane.f32.xlu0 %v1306_v13  ;;  %v1280_v1 = vmul.f32 %v2830_v29, %v1259_v14  ;;  %v1277_v18 = vmul.f32 %v2830_v29, %v1250_v15 }
 0x313   : > { %v1279_v5 = vmul.f32 %v2830_v29, %v1256_v17 }
 0x314   : > { %v2848_v16 = vsub.f32 %v1240_v32, %v1280_v1  ;;  %v2858_v24 = vsub.f32 %v2815_v33, %v1277_v18 }
 0x315   : > { %v2851_v19 = vsub.f32 %v1239_v38, %v1279_v5  ;;  %v2906_v5 = vld [vmem:[%s3128_s4] ss:$0 sm:$0xff] }
 0x316   : > { %v1296_v21 = vmul.f32 %v2848_v16, %v2848_v16  ;;  %v1293_v33 = vmul.f32 %v2858_v24, %v2858_v24 }
 0x317   : > { %v1295_v23 = vmul.f32 %v2851_v19, %v2851_v19 }
 0x318   : > { %v1312_v20 = vsel %vm1244_vm12, %v1296_v21, 0.0  ;;  %v1303_v39 = vsel %vm1244_vm12, %v1293_v33, 0.0 }
 0x319   : > { %1313 = vadd.xlane.f32.xlu2 %v1312_v20  ;;  %v1268_v25 = vpop.xlane.xlu0 %1267  ;;  %v1309_v26 = vsel %vm1244_vm12, %v1295_v23, 0.0  ;;  %v1262_v27 = vpop.xlane.xlu1 %1261 }
 0x31a   : > { %v1265_v30 = vpop.xlane.xlu2 %1264  ;;  %1310 = vadd.xlane.f32.xlu1 %v1309_v26  ;;  %v1281_v42 = vmul.f32 %v2830_v29, %v1262_v27  ;;  %v1283_v32 = vmul.f32 %v2830_v29, %v1268_v25  ;;  %v2915_v25 = vld [vmem:[%s3129_s14] ss:$0 sm:$0xff] }
 0x31b   : > { %v1282_v31 = vmul.f32 %v2830_v29, %v1265_v30 }
 0x31c   : > { %v2865_v43 = vsub.f32 %v1241_v52, %v1281_v42  ;;  %v2875_v36 = vsub.f32 %v1243_v59, %v1283_v32 }
 0x31d   : > { %v2869_v35 = vsub.f32 %v1242_v58, %v1282_v31 }
 0x31e   : > { %v1297_v37 = vmul.f32 %v2865_v43, %v2865_v43  ;;  %v1299_v45 = vmul.f32 %v2875_v36, %v2875_v36 }
 0x31f   : > { %v1298_v38 = vmul.f32 %v2869_v35, %v2869_v35 }
 0x320   : > { %v1315_v40 = vsel %vm1244_vm12, %v1297_v37, 0.0  ;;  %v1321_v46 = vsel %vm1244_vm12, %v1299_v45, 0.0 }
 0x321   : > { %v1318_v44 = vsel %vm1244_vm12, %v1298_v38, 0.0  ;;  %1304 = vadd.xlane.f32.xlu2 %v1303_v39  ;;  %1316 = vadd.xlane.f32.xlu0 %v1315_v40  ;;  %v1452_v40 = vld [vmem:[#allocation3] sm:$0xff] }
 0x322   : > { %1319 = vadd.xlane.f32.xlu1 %v1318_v44 }
 0x329   : > { %1322 = vadd.xlane.f32.xlu2 %v1321_v46  ;;  %v1454_v46 = vld [vmem:[#allocation3 + $0x10] sm:$0xff] }
 0x384   : > { %v1302_v48 = vpop.xlane.xlu1 %1301 }
 0x385   : > { %v1308_v49 = vpop.xlane.xlu0 %1307  ;;  %v1324_v50 = vmul.f32 %v1302_v48, %v2830_v29 }
 0x386   : > { %v1326_v51 = vmul.f32 %v1308_v49, %v2830_v29 }
 0x387   : > { %v1332_v47 = vadd.f32 1e-05, %v1324_v50 }
 0x388   : > { %v1334_v55 = vadd.f32 1e-05, %v1326_v51 }
 0x389   : > { %2062 = vrsqrt.f32 %v1332_v47  ;;  %vm1346_vm1 = vweird.f32 %v1332_v47 }
 0x38a   : > { %2064 = vrsqrt.f32 %v1334_v55  ;;  %vm1366_vm2 = vweird.f32 %v1334_v55 }
 0x38c   : > { %v1314_v41 = vpop.xlane.xlu2 %1313 }
 0x38d   : > { %v1328_v53 = vmul.f32 %v1314_v41, %v2830_v29  ;;  %v1311_v54 = vpop.xlane.xlu1 %1310 }
 0x38e   : > { %v1327_v56 = vmul.f32 %v1311_v54, %v2830_v29 }
 0x38f   : > { %v2063_v57 = vpop.eup %2062  ;;  %v2887_v58 = vadd.f32 1e-05, %v1328_v53 }
 0x390   : > { %v2065_v52 = vpop.eup %2064  ;;  %v1341_v59 = vmul.f32 %v2063_v57, %v1332_v47  ;;  %v2889_v60 = vadd.f32 1e-05, %v1327_v56  ;;  %vm1347_vm14 = vweird.f32 %v2063_v57 }
 0x391   : > { %v1361_v34 = vmul.f32 %v2065_v52, %v1334_v55  ;;  %2066 = vrsqrt.f32 %v2887_v58  ;;  %vm1367_vm15 = vweird.f32 %v2065_v52  ;;  %vm1348_vm3 = vmor %vm1346_vm1, %vm1347_vm14  ;;  %vm1386_vm7 = vweird.f32 %v2887_v58 }
 0x392   : > { %v1342_v61 = vmul.f32 %v2063_v57, %v1341_v59  ;;  %2068 = vrsqrt.f32 %v2889_v60  ;;  %vm1368_vm4 = vmor %vm1366_vm2, %vm1367_vm15  ;;  %vm1376_vm9 = vweird.f32 %v2889_v60 }
 0x393   : > { %v1362_v62 = vmul.f32 %v2065_v52, %v1361_v34 }
 0x394   : > { %v1343_v63 = vmul.f32 0.5, %v1342_v61  ;;  %v1305_v0 = vpop.xlane.xlu2 %1304  ;;  %v1317_v2 = vpop.xlane.xlu0 %1316 }
 0x395   : > { %v1363_v3 = vmul.f32 0.5, %v1362_v62  ;;  %v1325_v4 = vmul.f32 %v1305_v0, %v2830_v29  ;;  %v1329_v6 = vmul.f32 %v1317_v2, %v2830_v29  ;;  %v1320_v7 = vpop.xlane.xlu1 %1319  ;;  %v1456_v2 = vld [vmem:[#allocation3 + $0x20] sm:$0xff] }
 0x396   : > { %v1344_v22 = vsub.f32 1.5, %v1343_v63  ;;  %v1330_v8 = vmul.f32 %v1320_v7, %v2830_v29 }
 0x397   : > { %v2067_v10 = vpop.eup %2066  ;;  %v1364_v11 = vsub.f32 1.5, %v1363_v3  ;;  %v2896_v12 = vadd.f32 1e-05, %v1325_v4  ;;  %v2898_v13 = vadd.f32 1e-05, %v1329_v6  ;;  %v1455_v6 = vld [vmem:[#allocation3 + $0x18] sm:$0xff] }
 0x398   : > { %v2069_v14 = vpop.eup %2068  ;;  %v1345_v15 = vmul.f32 %v2063_v57, %v1344_v22  ;;  %v1381_v17 = vmul.f32 %v2067_v10, %v2887_v58  ;;  %v2901_v1 = vadd.f32 1e-05, %v1330_v8  ;;  %vm1387_vm5 = vweird.f32 %v2067_v10 }
 0x399   : > { %v1365_v18 = vmul.f32 %v2065_v52, %v1364_v11  ;;  %v1371_v21 = vmul.f32 %v2069_v14, %v2889_v60  ;;  %2070 = vrsqrt.f32 %v2896_v12  ;;  %vm1377_vm6 = vweird.f32 %v2069_v14  ;;  %vm1388_vm8 = vmor %vm1386_vm7, %vm1387_vm5 }
 0x39a   : > { %v1349_v23 = vsel %vm1348_vm3, %v2063_v57, %v1345_v15  ;;  %v1382_v20 = vmul.f32 %v2067_v10, %v1381_v17  ;;  %2072 = vrsqrt.f32 %v2898_v13  ;;  %vm1378_vm10 = vmor %vm1376_vm9, %vm1377_vm6  ;;  %vm1356_vm11 = vweird.f32 %v2896_v12 }
 0x39b   : > { %v1369_v26 = vsel %vm1368_vm4, %v2065_v52, %v1365_v18  ;;  %v1420_v27 = vmul.f32 %v1349_v23, %v2835_v9  ;;  %v1372_v30 = vmul.f32 %v2069_v14, %v1371_v21  ;;  %2074 = vrsqrt.f32 %v2901_v1 }
 0x39c   : > { %v1422_v42 = vmul.f32 %v1369_v26, %v2838_v28  ;;  %v1383_v31 = vmul.f32 0.5, %v1382_v20  ;;  %v1323_v32 = vpop.xlane.xlu2 %1322  ;;  %vm1396_vm14 = vweird.f32 %v2898_v13  ;;  %vm1406_vm3 = vweird.f32 %v2901_v1 }
 0x39d   : > { %v1432_v33 = vmul.f32 %v2906_v5, %v1420_v27  ;;  %v1373_v37 = vmul.f32 0.5, %v1372_v30  ;;  %v1331_v38 = vmul.f32 %v1323_v32, %v2830_v29 }
 0x39e   : > { %v1434_v39 = vmul.f32 %v2906_v5, %v1422_v42  ;;  %v1384_v44 = vsub.f32 1.5, %v1383_v31  ;;  %v1453_v31 = vld [vmem:[#allocation3 + $0x8] sm:$0xff] }
 0x39f   : > { %v2071_v45 = vpop.eup %2070  ;;  %v1444_v9 = vadd.f32 %v2915_v25, %v1432_v33  ;;  %v1374_v48 = vsub.f32 1.5, %v1373_v37  ;;  %v2924_v28 = vadd.f32 1e-05, %v1331_v38  ;;  %v1457_v33 = vld [vmem:[#allocation3 + $0x28] sm:$0xff] }
 0x3a0   : > { %v2073_v49 = vpop.eup %2072  ;;  %v1446_v50 = vadd.f32 %v2915_v25, %v1434_v39  ;;  %v1385_v51 = vmul.f32 %v2067_v10, %v1384_v44  ;;  %v1351_v29 = vmul.f32 %v2071_v45, %v2896_v12  ;;  %vm1357_vm0 = vweird.f32 %v2071_v45 }
 0x3a1   : > { %v1460_v47 = vadd.f32 %v1452_v40, %v1444_v9  ;;  %v1375_v55 = vmul.f32 %v2069_v14, %v1374_v48  ;;  %v1391_v41 = vmul.f32 %v2073_v49, %v2898_v13  ;;  %v2075_v53 = vpop.eup %2074  ;;  %2076 = vrsqrt.f32 %v2924_v28  ;;  %vm1358_vm1 = vmor %vm1356_vm11, %vm1357_vm0  ;;  %v1458_v40 = vld [vmem:[#allocation3 + $0x30] sm:$0xff] }
 0x3a2   : > { %v1462_v54 = vadd.f32 %v1454_v46, %v1446_v50  ;;  %v1389_v56 = vsel %vm1388_vm8, %v2067_v10, %v1385_v51  ;;  %v1352_v57 = vmul.f32 %v2071_v45, %v1351_v29  ;;  %v1401_v34 = vmul.f32 %v2075_v53, %v2901_v1  ;;  %v1459_v50 = vld [vmem:[#allocation3 + $0x38] sm:$0xff] }
 0x3a3   : > { %1468 = vst.msk [vmem:[#allocation3] sm:$0xff] %vm1244_vm12, %v1460_v47  ;;  %v1424_v58 = vmul.f32 %v1389_v56, %v2848_v16  ;;  %v1379_v52 = vsel %vm1378_vm10, %v2069_v14, %v1375_v55  ;;  %v1392_v59 = vmul.f32 %v2073_v49, %v1391_v41  ;;  %vm1397_vm13 = vweird.f32 %v2073_v49 }
 0x3a4   : > { %1470 = vst.msk [vmem:[#allocation3 + $0x10] sm:$0xff] %vm1244_vm12, %v1462_v54  ;;  %v1423_v60 = vmul.f32 %v1379_v52, %v2851_v19  ;;  %v1353_v61 = vmul.f32 0.5, %v1352_v57  ;;  %v1402_v0 = vmul.f32 %v2075_v53, %v1401_v34  ;;  %vm1407_vm15 = vweird.f32 %v2075_v53  ;;  %vm1398_vm2 = vmor %vm1396_vm14, %vm1397_vm13 }
 0x3a5   : > { %v1436_v62 = vmul.f32 %v2906_v5, %v1424_v58  ;;  %v1393_v63 = vmul.f32 0.5, %v1392_v59  ;;  %vm1408_vm4 = vmor %vm1406_vm3, %vm1407_vm15  ;;  %vm1416_vm6 = vweird.f32 %v2924_v28 }
 0x3a6   : > { %v1435_v3 = vmul.f32 %v2906_v5, %v1423_v60  ;;  %v1354_v4 = vsub.f32 1.5, %v1353_v61  ;;  %v1403_v22 = vmul.f32 0.5, %v1402_v0 }
 0x3a7   : > { %v1448_v16 = vadd.f32 %v2915_v25, %v1436_v62  ;;  %v1394_v7 = vsub.f32 1.5, %v1393_v63  ;;  %v2077_v8 = vpop.eup %2076 }
 0x3a8   : > { %v1447_v19 = vadd.f32 %v2915_v25, %v1435_v3  ;;  %v1355_v10 = vmul.f32 %v2071_v45, %v1354_v4  ;;  %v1404_v15 = vsub.f32 1.5, %v1403_v22  ;;  %v1411_v12 = vmul.f32 %v2077_v8, %v2924_v28 }
 0x3a9   : > { %v1464_v11 = vadd.f32 %v1456_v2, %v1448_v16  ;;  %v1395_v14 = vmul.f32 %v2073_v49, %v1394_v7  ;;  %vm1417_vm5 = vweird.f32 %v2077_v8 }
 0x3aa   : > { %v1463_v17 = vadd.f32 %v1455_v6, %v1447_v19  ;;  %v1359_v18 = vsel %vm1358_vm1, %v2071_v45, %v1355_v10  ;;  %v1405_v20 = vmul.f32 %v2075_v53, %v1404_v15  ;;  %v1412_v26 = vmul.f32 %v2077_v8, %v1411_v12  ;;  %vm1418_vm7 = vmor %vm1416_vm6, %vm1417_vm5 }
 0x3ab   : > { %1472 = vst.msk [vmem:[#allocation3 + $0x20] sm:$0xff] %vm1244_vm12, %v1464_v11  ;;  %v1421_v21 = vmul.f32 %v1359_v18, %v2858_v24  ;;  %v1399_v23 = vsel %vm1398_vm2, %v2073_v49, %v1395_v14 }
 0x3ac   : > { %1471 = vst.msk [vmem:[#allocation3 + $0x18] sm:$0xff] %vm1244_vm12, %v1463_v17  ;;  %v1425_v13 = vmul.f32 %v1399_v23, %v2865_v43  ;;  %v1409_v30 = vsel %vm1408_vm4, %v2075_v53, %v1405_v20  ;;  %v1413_v42 = vmul.f32 0.5, %v1412_v26 }
 0x3ad   : > { %v1433_v27 = vmul.f32 %v2906_v5, %v1421_v21  ;;  %v1426_v32 = vmul.f32 %v1409_v30, %v2869_v35 }
 0x3ae   : > { %v1437_v1 = vmul.f32 %v2906_v5, %v1425_v13  ;;  %v1414_v37 = vsub.f32 1.5, %v1413_v42 }
 0x3af   : > { %v1445_v24 = vadd.f32 %v2915_v25, %v1433_v27  ;;  %v1438_v43 = vmul.f32 %v2906_v5, %v1426_v32 }
 0x3b0   : > { %v1449_v38 = vadd.f32 %v2915_v25, %v1437_v1  ;;  %v1415_v44 = vmul.f32 %v2077_v8, %v1414_v37 }
 0x3b1   : > { %v1461_v39 = vadd.f32 %v1453_v31, %v1445_v24  ;;  %v1450_v46 = vadd.f32 %v2915_v25, %v1438_v43 }
 0x3b2   : > { %v1465_v45 = vadd.f32 %v1457_v33, %v1449_v38  ;;  %v1419_v35 = vsel %vm1418_vm7, %v2077_v8, %v1415_v44 }
 0x3b3   : > { %1469 = vst.msk [vmem:[#allocation3 + $0x8] sm:$0xff] %vm1244_vm12, %v1461_v39  ;;  %v1466_v9 = vadd.f32 %v1458_v40, %v1450_v46  ;;  %v1427_v48 = vmul.f32 %v1419_v35, %v2875_v36 }
 0x3b4   : > { %1473 = vst.msk [vmem:[#allocation3 + $0x28] sm:$0xff] %vm1244_vm12, %v1465_v45 }
 0x3b5   : > { %1474 = vst.msk [vmem:[#allocation3 + $0x30] sm:$0xff] %vm1244_vm12, %v1466_v9  ;;  %v1439_v49 = vmul.f32 %v2906_v5, %v1427_v48 }
 0x3b7   : > { %v1451_v51 = vadd.f32 %v2915_v25, %v1439_v49  ;;  %1479 = sbr.rel (%p1850_p2) target bundleno = 1103 (0x44f), region = 88 }
 0x3b9   : > { %v1467_v28 = vadd.f32 %v1459_v50, %v1451_v51 }
 0x3bb   : > { %1475 = vst.msk [vmem:[#allocation3 + $0x38] sm:$0xff] %vm1244_vm12, %v1467_v28 }
 0x3bc   : > { %v1505_v29 = vld [vmem:[%s3131_s13 + $0x8] sm:$0xff]  ;;  %v1504_v36 = vld [vmem:[%s3131_s13] sm:$0xff]  ;;  %v1486_v55 = vld [vmem:[#allocation3 + $0x30] sm:$0xff]  ;;  %vm1571_vm8 = vcmask 261120  }
 0x3bd   : > { %v1484_v47 = vld [vmem:[#allocation3 + $0x20] sm:$0xff]  ;;  %1913 = vmatpush.msra.mxu2 %v1505_v29  ;;  %1914 = vmatpush.msra.mxu3 %v1505_v29  ;;  %v1482_v41 = vld [vmem:[#allocation3 + $0x10] sm:$0xff]  ;;  %v1494_v53 = vmul.f32 0.5, %v1486_v55  ;;  %v1485_v57 = vld [vmem:[#allocation3 + $0x28] sm:$0xff] }
 0x3be   : > { %v1492_v5 = vmul.f32 0.5, %v1484_v47  ;;  %v1480_v25 = vld [vmem:[#allocation3] sm:$0xff]  ;;  %1544 = vmatpush.msra.mxu0 %v1505_v29  ;;  %1912 = vmatpush.msra.mxu1 %v1505_v29  ;;  %v1490_v56 = vmul.f32 0.5, %v1482_v41  ;;  %v1481_v59 = vld [vmem:[#allocation3 + $0x8] sm:$0xff]  ;;  %v1483_v62 = vld [vmem:[#allocation3 + $0x18] sm:$0xff]  ;;  %v1493_v63 = vmul.f32 0.5, %v1485_v57 }
 0x3bf   : > { %v1488_v54 = vmul.f32 0.5, %v1480_v25  ;;  %1916 = vmatpush.msra.mxu2 %v1504_v36  ;;  %1917 = vmatpush.msra.mxu3 %v1504_v36  ;;  %v1502_v34 = vmax.f32 %v1494_v53, 0.0  ;;  %v1489_v2 = vmul.f32 0.5, %v1481_v59  ;;  %v1491_v3 = vmul.f32 0.5, %v1483_v62 }
 0x3c0   : > { %v1500_v58 = vmax.f32 %v1492_v5, 0.0  ;;  %1545 = vmatpush.msra.mxu0 %v1504_v36  ;;  %1915 = vmatpush.msra.mxu1 %v1504_v36  ;;  %v1498_v61 = vmax.f32 %v1490_v56, 0.0  ;;  %v1501_v4 = vmax.f32 %v1493_v63, 0.0 }
 0x3c1   : > { %v1496_v60 = vmax.f32 %v1488_v54, 0.0  ;;  %1857 = vmatmul.msk.f32.vlgmr.msra.gmra.mxu3 %vm1244_vm12, %v1502_v34  ;;  %v1497_v6 = vmax.f32 %v1489_v2, 0.0  ;;  %v1499_v7 = vmax.f32 %v1491_v3, 0.0 }
 0x3c2   : > { %v1487_v52 = vld [vmem:[#allocation3 + $0x38] sm:$0xff]  ;;  %1855 = vmatmul.msk.f32.vlgmr.msra.gmra.mxu2 %vm1244_vm12, %v1500_v58  ;;  %1853 = vmatmul.msk.f32.vlgmr.msra.gmra.mxu1 %vm1244_vm12, %v1498_v61 }
 0x3c3   : > { %1851 = vmatmul.msk.f32.vlgmr.msra.gmra.mxu0 %vm1244_vm12, %v1496_v60  ;;  %v1495_v0 = vmul.f32 0.5, %v1487_v52 }
 0x3c5   : > { %v1503_v16 = vmax.f32 %v1495_v0, 0.0 }
 0x3c9   : > { %1858 = vmatmul.msk.f32.gmra.mxu3 %vm1244_vm12, %v1503_v16 }
 0x3ca   : > { %1856 = vmatmul.msk.f32.gmra.mxu2 %vm1244_vm12, %v1501_v4  ;;  %1854 = vmatmul.msk.f32.gmra.mxu1 %vm1244_vm12, %v1499_v7 }
 0x3cb   : > { %1852 = vmatmul.msk.f32.gmra.mxu0 %vm1244_vm12, %v1497_v6 }
 0x43f   : > { %v1553_v8 = vpop.f32.mrf.mxu1 }
 0x440   : > { %v1547_v22 = vpop.f32.mrf.mxu0  ;;  %1574 = vst.msk [vmem:[%s2539_s17 + $0x10] sm:$0xff] %vm1571_vm8, %v1553_v8 }
 0x441   : > { %1572 = vst.msk [vmem:[%s2539_s17] sm:$0xff] %vm1571_vm8, %v1547_v22 }
 0x444   : > { %v1565_v10 = vpop.f32.mrf.mxu3 }
 0x445   : > { %v1559_v19 = vpop.f32.mrf.mxu2  ;;  %1578 = vst.msk [vmem:[%s2539_s17 + $0x30] sm:$0xff] %vm1571_vm8, %v1565_v10 }
 0x446   : > { %1576 = vst.msk [vmem:[%s2539_s17 + $0x20] sm:$0xff] %vm1571_vm8, %v1559_v19 }
 0x447   : > { %v1556_v14 = vpop.f32.mrf.mxu1 }
 0x448   : > { %v1550_v11 = vpop.f32.mrf.mxu0  ;;  %1575 = vst.msk [vmem:[%s2539_s17 + $0x18] sm:$0xff] %vm1571_vm8, %v1556_v14 }
 0x449   : > { %1573 = vst.msk [vmem:[%s2539_s17 + $0x8] sm:$0xff] %vm1571_vm8, %v1550_v11 }
 0x44c   : > { %v1568_v12 = vpop.f32.mrf.mxu3 }
 0x44d   : > { %v1562_v15 = vpop.f32.mrf.mxu2  ;;  %1579 = vst.msk [vmem:[%s2539_s17 + $0x38] sm:$0xff] %vm1571_vm8, %v1568_v12 }
 0x44e   : > { %1577 = vst.msk [vmem:[%s2539_s17 + $0x28] sm:$0xff] %vm1571_vm8, %v1562_v15 }
 0x44f PF: > { %s1865_s12 = sshll.u32 %s2252_s15, 6  ;;  %s3133_s7 = sld [smem:[#allocation34_spill]] }
 0x450   : > { %s1596_s11 = sshll.u32 %s2539_s17, 4  ;;  %s1581_s20 = scalar_lea.sflag [#allocation6], %s2500_s5  ;;  %s1597_s11 = int_to_ptr.vmem [resolvable:$true] %s1596_s11 }
 0x455   : > { %s1595_s0 = scalar_lea.hbm %s3133_s7, %s1865_s12  ;;  %s2158_s15 = scalar_lea.hbm %s3133_s7, 128 }
 0x456   : > { %s1598_s10 = sshll.u32 %s1595_s0, 4  ;;  %s1599_s10 = int_to_ptr.hbm [resolvable:$true] %s1598_s10 }
 0x457   : > { %s2152_s4 = sshra.s32 %s1599_s10, 4  ;;  %s2153_s4 = int_to_ptr.hbm [resolvable:$true] %s2152_s4 }
 0x458   : > { %s2154_s28 = scalar_lea.hbm %s2153_s4, 64  ;;  %p2159_p11 = scmp.lt.s32.totalorder %s2153_s4, %s3133_s7 }
 0x459   : > { %p2155_p5 = scmp.ne.s32.totalorder %s2153_s4, %s2154_s28  ;;  %p2160_p12 = scmp.lt.s32.totalorder %s2158_s15, %s2154_s28 }
 0x45b   : > { %p2156_p4 = pnand %p2155_p5, %p2426_p8  ;;  %p2161_p13 = por %p2160_p12, %p2159_p11 }
 0x45d   : > { %p2157_p7 = pneg %p2156_p4 }
 0x45f   : > { %p2162_p1 = pnand %p2161_p13, %p2157_p7 }
 0x461   : > { %2165 = shalt.err (!%p2162_p1)
}
 0x462   : > { %s2274_s17 = smov 128   ;;  %s2275_s5 = smov 8  }
 0x463   : > { %1922 = dma.vmem_to_hbm [thread:$0]  (%p2426_p8), %s1597_s11, 1024, %s1599_s10, %s1581_s20, %s2274_s17, %s2274_s17, %s2275_s5  }
 0x464 PF: > { %s3134_s22 = sld [smem:[#allocation13_spill]]  ;;  %p1936_p3 = scmp.ge.s32.totalorder %s2264_s18, 2 }
 0x466   : > { %p1932_p10 = pnand %p1936_p3, %p2430_p9 }
 0x468   : > { %p1933_p0 = pneg %p1932_p10 }
 0x46a   : > { %s1613_s21 = sand.u32 1, %s3134_s22  }
 0x46b   : > { %s1614_s12 = scalar_lea.sflag [#allocation6], %s1613_s21 }
 0x46c   : > { %2219 = dma.done.wait (%p1933_p0), %s1614_s12, 1024  }
 0x46d   : > { %2221 = vsyncadd (%p1933_p0), %s1614_s12, 4294966272  ;;  %s32_s18 = sadd.s32 1, %s2264_s18   ;;  %s3136_s14 = sld [smem:[#allocation15_spill]] }
 0x46e   : > { %p29_p6 = scmp.ge.s32.totalorder %s32_s18, 6   ;;  %s3137_s15 = sld [smem:[#allocation16_spill]] }
 0x46f   : > { %s3138_s16 = sld [smem:[#allocation19_spill]]  ;;  %s3140_s25 = smov %s2228_s26 }
 0x470   : > { %s3139_s17 = sld [smem:[#allocation20_spill]]  ;;  %s3141_s26 = smov %s2232_s27 }
 0x471   : > { %s3142_s27 = smov %s2488_s23  ;;  %s3143_s28 = smov %s2240_s29 }
 0x472   : > { %s3144_s29 = smov %s2244_s30  ;;  %s3145_s30 = smov %s2485_s6 }
 0x473   :  { %31 = sbr.rel (!%p29_p6) target bundleno = 26 (0x1a), region = 150 }
 0x478   :  { %1620 = vsyncpa [#allocation5], 1 }
 0x479   :  { %1622 = vsyncpa [#allocation5 + $0x1], 1 }
 0x47a   :  { %1623 = vsyncpa [#allocation8], 1 }
 0x47b   :  { %1625 = vsyncpa [#allocation8 + $0x1], 1 }
 0x47c   :  { %1626 = vsyncpa [#allocation6], 1 }
 0x47d   :  { %1628 = vsyncpa [#allocation6 + $0x1], 1 }

</bundles_post_ra>
